<compile_context>
chip_gen: v7x
topology: tpu7x:2x2x1
jax: 0.10.0
libtpu: 0.0.40
codegen_flags: <defaults>
</compile_context>

<pallas_src>
import jax
import jax.numpy as jnp
from jax.experimental import pallas as pl
from jax.experimental.pallas import tpu as pltpu

KH = KW = 3  # 3x3 conv, pad 1


def _conv3x3_kernel(x_ref, w_ref, o_ref, pad_ref):
    """3x3 conv, stride 1, pad 1, for one (batch, row-tile) grid step.

    x_ref   : (1, H, W, Cin)        full NHWC image (resident per batch)
    w_ref   : (KH, Cin, KW*Cout)    kw-folded weights (resident)
    o_ref   : (1, tile_h, W, Cout)  this step's output rows
    pad_ref : (H+2, W, Cin)         VMEM scratch: H-padded image (per batch)
    """
    H = x_ref.shape[1]
    W = x_ref.shape[2]
    cin = x_ref.shape[3]
    tile_h = o_ref.shape[1]
    cout = o_ref.shape[3]

    h = pl.program_id(1)
    r0 = h * tile_h

    # Build the H-padded image once per batch element (rows 0 and H+1 are the
    # zero padding rows; interior is a resident VMEM->VMEM copy).  No full
    # scratch zero-fill, no W padding (kw shifts are handled on the output).
    @pl.when(h == 0)
    def _build_padded_image():
        zero_row = jnp.zeros((1, W, cin), pad_ref.dtype)
        pad_ref[0:1, :, :] = zero_row
        pad_ref[H + 1:H + 2, :, :] = zero_row
        pad_ref[1:H + 1, :, :] = x_ref[0]

    # Conv as 3 matmuls (one per kh) with N = KW*Cout = 96 columns, then the
    # three kw taps are recombined with +/-1 shifts along W on 32-wide slices.
    acc = jnp.zeros((tile_h, W, cout), jnp.float32)
    zero_col = jnp.zeros((tile_h, 1, cout), jnp.float32)
    for kh in range(KH):
        # Rows r0+kh .. r0+kh+tile_h-1 of the padded image == x rows
        # r0+kh-1 .. (zero outside [0, H)).  Leading-dim slice -> tile aligned.
        lhs = pad_ref[pl.ds(r0 + kh, tile_h), :, :]          # (tile_h, W, Cin)
        y = jax.lax.dot_general(
            lhs, w_ref[kh],
            dimension_numbers=(((2,), (0,)), ((), ())),
            preferred_element_type=jnp.float32)              # (tile_h, W, 3*Cout)

        # kw = 1 (center), kw = 0 (shift right by 1), kw = 2 (shift left by 1)
        y_left = jnp.concatenate([zero_col, y[:, :W - 1, 0:cout]], axis=1)
        y_right = jnp.concatenate([y[:, 1:, 2 * cout:3 * cout], zero_col], axis=1)
        acc = acc + y[:, :, cout:2 * cout] + y_left + y_right

    o_ref[0] = acc.astype(o_ref.dtype)


def _pick_tile_h(H: int) -> int:
    # Prefer the largest row tile (fewest grid steps): full H for small images,
    # otherwise the largest divisor of H that is <= 16 (bounds the size of the
    # per-step matmul outputs / accumulator).
    if H <= 16:
        return H
    for t in range(16, 3, -1):
        if H % t == 0:
            return t
    return H  # fallback: single tile


def conv_cat_forward(x24, x4, x11, x18, x32, weight, compute_dtype=None):
    """Inputs are NCHW (PyTorch convention), weight is OIHW. Returns NCHW.

    compute_dtype: dtype used for the MXU operands (e.g. jnp.bfloat16 on
    v6e/v7x). Accumulation is always f32; output keeps x24.dtype.
    """
    N, Cin, H, W = x24.shape
    Cout, Cin_w, kh_, kw_ = weight.shape
    assert (Cin_w, kh_, kw_) == (Cin, KH, KW)

    out_dtype = x24.dtype
    if compute_dtype is None:
        compute_dtype = x24.dtype

    # Only the conv input changes layout; pass-throughs stay NCHW.
    x24n = jnp.transpose(x24, (0, 2, 3, 1)).astype(compute_dtype)     # (N,H,W,Cin)
    # Fold kw into the matmul N dim: w_folded[kh, ci, kw*Cout + co] = W[co,ci,kh,kw]
    w_folded = jnp.transpose(weight, (2, 1, 3, 0)).reshape(
        KH, Cin, KW * Cout).astype(compute_dtype)                      # (3,128,96)

    tile_h = _pick_tile_h(H)
    assert H % tile_h == 0
    nh = H // tile_h

    conv_nhwc = pl.pallas_call(
        _conv3x3_kernel,
        out_shape=jax.ShapeDtypeStruct((N, H, W, Cout), out_dtype),
        grid=(N, nh),
        in_specs=[
            # Full image per batch element; index does not depend on h, so it
            # is DMA'd once per batch and stays resident across row tiles.
            pl.BlockSpec((1, H, W, Cin), lambda n, h: (n, 0, 0, 0)),
            pl.BlockSpec((KH, Cin, KW * Cout), lambda n, h: (0, 0, 0)),
        ],
        out_specs=pl.BlockSpec((1, tile_h, W, Cout), lambda n, h: (n, h, 0, 0)),
        scratch_shapes=[pltpu.VMEM((H + 2, W, Cin), compute_dtype)],
        compiler_params=pltpu.CompilerParams(
            # h carries the per-batch padded-image state -> "arbitrary";
            # batch axis is independent -> "parallel" (megacore sharding).
            dimension_semantics=("parallel", "arbitrary")),
    )(x24n, w_folded)

    conv_nchw = jnp.transpose(conv_nhwc, (0, 3, 1, 2))                 # (N,Cout,H,W)

    # Channel concat stays in the wrapper: a single contiguous NCHW copy for
    # the 160 pass-through channels instead of masked partial stores in-kernel.
    return jnp.concatenate([x4, x11, x18, conv_nchw, x32], axis=1)


if __name__ == "__main__":
    # Channel counts fixed by the module (conv 128->32, concat 64+32+32+32+32
    # = 192 channels); spatial dims shrunk 56 -> 16, batch bumped to 2 so both
    # grid axes are exercised while staying small.
    key = jax.random.PRNGKey(0)
    k24, k4, k11, k18, k32, kw = jax.random.split(key, 6)

    N, H, W = 2, 16, 16
    x24 = jax.random.normal(k24, (N, 128, H, W), jnp.float32)
    x4 = jax.random.normal(k4, (N, 64, H, W), jnp.float32)
    x11 = jax.random.normal(k11, (N, 32, H, W), jnp.float32)
    x18 = jax.random.normal(k18, (N, 32, H, W), jnp.float32)
    x32 = jax.random.normal(k32, (N, 32, H, W), jnp.float32)

    # deterministic Conv2d(128, 32, 3, 3) weight, kaiming-like scale, OIHW
    fan_in = 128 * 3 * 3
    weight = jax.random.normal(kw, (32, 128, 3, 3), jnp.float32) * (2.0 / fan_in) ** 0.5

    # --- f32 path (module semantics) ---
    out = conv_cat_forward(x24, x4, x11, x18, x32, weight)
    out = jax.block_until_ready(out)

    ref_conv = jax.lax.conv_general_dilated(
        x24, weight, window_strides=(1, 1), padding="SAME",
        dimension_numbers=("NCHW", "OIHW", "NCHW"))
    ref = jnp.concatenate([x4, x11, x18, ref_conv, x32], axis=1)

    assert out.shape == (N, 192, H, W), out.shape
    assert jnp.allclose(out, ref, atol=1e-3, rtol=1e-3), "f32 mismatch vs reference"

    # --- bf16 compute path (recommended MXU operand dtype on v6e/v7x) ---
    out_bf16 = conv_cat_forward(x24, x4, x11, x18, x32, weight,
                                compute_dtype=jnp.bfloat16)
    out_bf16 = jax.block_until_ready(out_bf16)

    ref_conv_bf16 = jax.lax.conv_general_dilated(
        x24.astype(jnp.bfloat16), weight.astype(jnp.bfloat16),
        window_strides=(1, 1), padding="SAME",
        dimension_numbers=("NCHW", "OIHW", "NCHW"),
        preferred_element_type=jnp.float32)
    ref_bf16 = jnp.concatenate([x4, x11, x18, ref_conv_bf16, x32], axis=1)
    assert jnp.allclose(out_bf16, ref_bf16, atol=1e-2, rtol=1e-2), \
        "bf16 mismatch vs bf16 reference"

    print("KERNEL_OK")
</pallas_src>

<mosaic_0001>
module attributes {stable_mosaic.version = 11 : i64} {
  func.func @_conv3x3_kernel(%arg0: i32, %arg1: i32, %arg2: memref<1x16x16x128xf32, #tpu.memory_space<vmem>>, %arg3: memref<3x128x96xf32, #tpu.memory_space<vmem>>, %arg4: memref<1x16x16x32xf32, #tpu.memory_space<vmem>>, %arg5: memref<18x16x128xf32, #tpu.memory_space<vmem>>) attributes {dimension_semantics = [#tpu.dimension_semantics<parallel>, #tpu.dimension_semantics<arbitrary>], iteration_bounds = array<i64: 2, 1>, scalar_prefetch = 0 : i64, scratch_operands = 1 : i64, tpu.core_type = #tpu.core_type<tc>, window_params = [{transform_indices = @transform_0, window_bounds = array<i64: 1, 16, 16, 128>}, {pipeline_mode = #tpu.pipeline_mode<synchronous>, transform_indices = @transform_1, window_bounds = array<i64: 3, 128, 96>}, {transform_indices = @transform_2, window_bounds = array<i64: 1, 16, 16, 32>}]} {
    %c16_i32 = arith.constant 16 : i32
    %0 = arith.muli %arg1, %c16_i32 : i32
    %c0_i32 = arith.constant 0 : i32
    %1 = arith.cmpi eq, %arg1, %c0_i32 : i32
    %2 = arith.extui %1 : i1 to i32
    %c0_i32_0 = arith.constant 0 : i32
    %3 = arith.cmpi ne, %2, %c0_i32_0 : i32
    scf.if %3 {
      %cst_22 = arith.constant 0.000000e+00 : f32
      %51 = vector.broadcast %cst_22 : f32 to vector<1x16x128xf32>
      %c0_23 = arith.constant 0 : index
      %c0_24 = arith.constant 0 : index
      %c0_25 = arith.constant 0 : index
      %52 = vector.load %arg5[%c0_23, %c0_24, %c0_25] : memref<18x16x128xf32, #tpu.memory_space<vmem>>, vector<1x16x128xf32>
      tpu.vector_store %arg5[%c0_23, %c0_24, %c0_25], %51 {strides = array<i32>} : memref<18x16x128xf32, #tpu.memory_space<vmem>>, vector<1x16x128xf32>,
      %c17 = arith.constant 17 : index
      %c0_26 = arith.constant 0 : index
      %c0_27 = arith.constant 0 : index
      %53 = vector.load %arg5[%c17, %c0_26, %c0_27] : memref<18x16x128xf32, #tpu.memory_space<vmem>>, vector<1x16x128xf32>
      tpu.vector_store %arg5[%c17, %c0_26, %c0_27], %51 {strides = array<i32>} : memref<18x16x128xf32, #tpu.memory_space<vmem>>, vector<1x16x128xf32>,
      %c0_28 = arith.constant 0 : index
      %c0_29 = arith.constant 0 : index
      %c0_30 = arith.constant 0 : index
      %c0_31 = arith.constant 0 : index
      %54 = vector.load %arg2[%c0_28, %c0_29, %c0_30, %c0_31] : memref<1x16x16x128xf32, #tpu.memory_space<vmem>>, vector<1x16x16x128xf32>
      %55 = vector.shape_cast %54 : vector<1x16x16x128xf32> to vector<16x16x128xf32>
      %c1_32 = arith.constant 1 : index
      %c0_33 = arith.constant 0 : index
      %c0_34 = arith.constant 0 : index
      %56 = vector.load %arg5[%c1_32, %c0_33, %c0_34] : memref<18x16x128xf32, #tpu.memory_space<vmem>>, vector<16x16x128xf32>
      tpu.vector_store %arg5[%c1_32, %c0_33, %c0_34], %55 {strides = array<i32>} : memref<18x16x128xf32, #tpu.memory_space<vmem>>, vector<16x16x128xf32>,
    } else {
    }
    %cst = arith.constant 0.000000e+00 : f32
    %4 = vector.broadcast %cst : f32 to vector<16x16x32xf32>
    %cst_1 = arith.constant 0.000000e+00 : f32
    %5 = vector.broadcast %cst_1 : f32 to vector<16x1x32xf32>
    %c0_i32_2 = arith.constant 0 : i32
    %6 = arith.addi %0, %c0_i32_2 : i32
    %7 = arith.index_cast %6 : i32 to index
    %c0 = arith.constant 0 : index
    %c0_3 = arith.constant 0 : index
    %8 = vector.load %arg5[%7, %c0, %c0_3] : memref<18x16x128xf32, #tpu.memory_space<vmem>>, vector<16x16x128xf32>
    %c0_4 = arith.constant 0 : index
    %c0_5 = arith.constant 0 : index
    %c0_6 = arith.constant 0 : index
    %9 = vector.load %arg3[%c0_4, %c0_5, %c0_6] : memref<3x128x96xf32, #tpu.memory_space<vmem>>, vector<1x128x96xf32>
    %10 = vector.shape_cast %9 : vector<1x128x96xf32> to vector<128x96xf32>
    %cst_7 = arith.constant dense<0.000000e+00> : vector<16x16x96xf32>
    %11 = tpu.matmul %8, %10, %cst_7 {dimension_numbers = #tpu.dot_dimension_numbers<[2], [0], [0, 1], [1], [0, 0, 0, 1, 1, 1], [], []>} : vector<16x16x128xf32>, vector<128x96xf32>, vector<16x16x96xf32> -> vector<16x16x96xf32>
    %12 = vector.extract_strided_slice %11 {offsets = [0, 0, 0], sizes = [16, 15, 32], strides = [1, 1, 1]} : vector<16x16x96xf32> to vector<16x15x32xf32>
    %13 = tpu.concatenate %5, %12 in 1 : vector<16x1x32xf32>, vector<16x15x32xf32> -> vector<16x16x32xf32>
    %14 = vector.extract_strided_slice %11 {offsets = [0, 1, 64], sizes = [16, 15, 32], strides = [1, 1, 1]} : vector<16x16x96xf32> to vector<16x15x32xf32>
    %15 = tpu.concatenate %14, %5 in 1 : vector<16x15x32xf32>, vector<16x1x32xf32> -> vector<16x16x32xf32>
    %16 = vector.extract_strided_slice %11 {offsets = [0, 0, 32], sizes = [16, 16, 32], strides = [1, 1, 1]} : vector<16x16x96xf32> to vector<16x16x32xf32>
    %17 = arith.addf %4, %16 : vector<16x16x32xf32>
    %18 = arith.addf %17, %13 : vector<16x16x32xf32>
    %19 = arith.addf %18, %15 : vector<16x16x32xf32>
    %c1_i32 = arith.constant 1 : i32
    %20 = arith.addi %0, %c1_i32 : i32
    %21 = arith.index_cast %20 : i32 to index
    %c0_8 = arith.constant 0 : index
    %c0_9 = arith.constant 0 : index
    %22 = vector.load %arg5[%21, %c0_8, %c0_9] : memref<18x16x128xf32, #tpu.memory_space<vmem>>, vector<16x16x128xf32>
    %c1 = arith.constant 1 : index
    %c0_10 = arith.constant 0 : index
    %c0_11 = arith.constant 0 : index
    %23 = vector.load %arg3[%c1, %c0_10, %c0_11] : memref<3x128x96xf32, #tpu.memory_space<vmem>>, vector<1x128x96xf32>
    %24 = vector.shape_cast %23 : vector<1x128x96xf32> to vector<128x96xf32>
    %cst_12 = arith.constant dense<0.000000e+00> : vector<16x16x96xf32>
    %25 = tpu.matmul %22, %24, %cst_12 {dimension_numbers = #tpu.dot_dimension_numbers<[2], [0], [0, 1], [1], [0, 0, 0, 1, 1, 1], [], []>} : vector<16x16x128xf32>, vector<128x96xf32>, vector<16x16x96xf32> -> vector<16x16x96xf32>
    %26 = vector.extract_strided_slice %25 {offsets = [0, 0, 0], sizes = [16, 15, 32], strides = [1, 1, 1]} : vector<16x16x96xf32> to vector<16x15x32xf32>
    %27 = tpu.concatenate %5, %26 in 1 : vector<16x1x32xf32>, vector<16x15x32xf32> -> vector<16x16x32xf32>
    %28 = vector.extract_strided_slice %25 {offsets = [0, 1, 64], sizes = [16, 15, 32], strides = [1, 1, 1]} : vector<16x16x96xf32> to vector<16x15x32xf32>
    %29 = tpu.concatenate %28, %5 in 1 : vector<16x15x32xf32>, vector<16x1x32xf32> -> vector<16x16x32xf32>
    %30 = vector.extract_strided_slice %25 {offsets = [0, 0, 32], sizes = [16, 16, 32], strides = [1, 1, 1]} : vector<16x16x96xf32> to vector<16x16x32xf32>
    %31 = arith.addf %19, %30 : vector<16x16x32xf32>
    %32 = arith.addf %31, %27 : vector<16x16x32xf32>
    %33 = arith.addf %32, %29 : vector<16x16x32xf32>
    %c2_i32 = arith.constant 2 : i32
    %34 = arith.addi %0, %c2_i32 : i32
    %35 = arith.index_cast %34 : i32 to index
    %c0_13 = arith.constant 0 : index
    %c0_14 = arith.constant 0 : index
    %36 = vector.load %arg5[%35, %c0_13, %c0_14] : memref<18x16x128xf32, #tpu.memory_space<vmem>>, vector<16x16x128xf32>
    %c2 = arith.constant 2 : index
    %c0_15 = arith.constant 0 : index
    %c0_16 = arith.constant 0 : index
    %37 = vector.load %arg3[%c2, %c0_15, %c0_16] : memref<3x128x96xf32, #tpu.memory_space<vmem>>, vector<1x128x96xf32>
    %38 = vector.shape_cast %37 : vector<1x128x96xf32> to vector<128x96xf32>
    %cst_17 = arith.constant dense<0.000000e+00> : vector<16x16x96xf32>
    %39 = tpu.matmul %36, %38, %cst_17 {dimension_numbers = #tpu.dot_dimension_numbers<[2], [0], [0, 1], [1], [0, 0, 0, 1, 1, 1], [], []>} : vector<16x16x128xf32>, vector<128x96xf32>, vector<16x16x96xf32> -> vector<16x16x96xf32>
    %40 = vector.extract_strided_slice %39 {offsets = [0, 0, 0], sizes = [16, 15, 32], strides = [1, 1, 1]} : vector<16x16x96xf32> to vector<16x15x32xf32>
    %41 = tpu.concatenate %5, %40 in 1 : vector<16x1x32xf32>, vector<16x15x32xf32> -> vector<16x16x32xf32>
    %42 = vector.extract_strided_slice %39 {offsets = [0, 1, 64], sizes = [16, 15, 32], strides = [1, 1, 1]} : vector<16x16x96xf32> to vector<16x15x32xf32>
    %43 = tpu.concatenate %42, %5 in 1 : vector<16x15x32xf32>, vector<16x1x32xf32> -> vector<16x16x32xf32>
    %44 = vector.extract_strided_slice %39 {offsets = [0, 0, 32], sizes = [16, 16, 32], strides = [1, 1, 1]} : vector<16x16x96xf32> to vector<16x16x32xf32>
    %45 = arith.addf %33, %44 : vector<16x16x32xf32>
    %46 = arith.addf %45, %41 : vector<16x16x32xf32>
    %47 = arith.addf %46, %43 : vector<16x16x32xf32>
    %c0_18 = arith.constant 0 : index
    %c0_19 = arith.constant 0 : index
    %c0_20 = arith.constant 0 : index
    %c0_21 = arith.constant 0 : index
    %48 = vector.load %arg4[%c0_18, %c0_19, %c0_20, %c0_21] : memref<1x16x16x32xf32, #tpu.memory_space<vmem>>, vector<1x16x16x32xf32>
    %49 = vector.shape_cast %48 : vector<1x16x16x32xf32> to vector<16x16x32xf32>
    %50 = vector.shape_cast %47 : vector<16x16x32xf32> to vector<1x16x16x32xf32>
    tpu.vector_store %arg4[%c0_18, %c0_19, %c0_20, %c0_21], %50 {strides = array<i32>} : memref<1x16x16x32xf32, #tpu.memory_space<vmem>>, vector<1x16x16x32xf32>,
    return
  }
  func.func @transform_0(%arg0: i32, %arg1: i32) -> (i32, i32, i32, i32) {
    %c0_i32 = arith.constant 0 : i32
    %c0_i32_0 = arith.constant 0 : i32
    %c0_i32_1 = arith.constant 0 : i32
    %c0_i32_2 = arith.constant 0 : i32
    return %arg0, %c0_i32, %c0_i32_0, %c0_i32_1 : i32, i32, i32, i32
  }
  func.func @transform_1(%arg0: i32, %arg1: i32) -> (i32, i32, i32) {
    %c0_i32 = arith.constant 0 : i32
    %c0_i32_0 = arith.constant 0 : i32
    %c0_i32_1 = arith.constant 0 : i32
    %c0_i32_2 = arith.constant 0 : i32
    return %c0_i32, %c0_i32_0, %c0_i32_1 : i32, i32, i32
  }
  func.func @transform_2(%arg0: i32, %arg1: i32) -> (i32, i32, i32, i32) {
    %c0_i32 = arith.constant 0 : i32
    %c0_i32_0 = arith.constant 0 : i32
    %c0_i32_1 = arith.constant 0 : i32
    return %arg0, %arg1, %c0_i32, %c0_i32_0 : i32, i32, i32, i32
  }
}

</mosaic_0001>

<bundles_post_ra>
// kernel: tpu_custom_call.1
= control target key start
LH: loop header
LB: loop body
LE: loop exit
PB: predicated region body
PF: predicated region fallthrough
CT: control target
= control target key end

     0   :  { %7 = vsyncpa [#allocation4], 0  ;;  %s5951_s0 = inlined_call_operand.vmem [shape: f32[2,16,16,128], index: 0, kind: input, shape index: {}]   ;;  %s5952_s1 = inlined_call_operand.vmem [shape: f32[3,128,96], index: 1, kind: input, shape index: {}]   ;;  %s5953_s2 = inlined_call_operand.hbm [shape: f32[2,16,16,32], index: 2, kind: output, shape index: {}]  }
   0x1   :  { %9 = vsyncpa [#allocation4 + $0x1], 0  ;;  %s3628_s9 = smov 0   ;;  %s3630_s10 = smov 0  }
   0x2   :  { %s3632_s11 = smov 0   ;;  %s3634_s12 = smov 0  }
   0x3   :  { %s3636_s13 = smov 0   ;;  %s3638_s14 = smov 0  }
   0x4 LB: > { %s2860_s15 = sadd.s32 4294967295, %s3605_s14   ;;  %s2861_s16 = sadd.s32 4294967294, %s3605_s14   ;;  %s3605_s14 = sphi %s3638_s14, %s15_s14   ;;  %s3601_s13 = sphi %s3636_s13, %s6510_s13   ;;  %s3597_s12 = sphi %s3634_s12, %s6509_s12   ;;  %s3593_s11 = sphi %s3632_s11, %s6508_s11   ;;  %s3589_s10 = sphi %s3630_s10, %s6507_s10   ;;  %s3585_s9 = sphi %s3628_s9, %s6506_s9  }
   0x5   : > { %s27_s17 = sadd.s32 1, %s3601_s13  ;;  %s83_s18 = sadd.s32 1, %s3593_s11 }
   0x6   : > { %p29_p0 = scmp.ge.s32.totalorder %s27_s17, 2  ;;  %p93_p1 = scmp.ne.s32.totalorder %s3593_s11, %s3589_s10 }
   0x7   : > { %p94_p2 = scmp.eq.s32.totalorder %s2860_s15, 1  ;;  %p99_p3 = scmp.ne.s32.totalorder %s3589_s10, %s3585_s9 }
   0x8   : > { %s6512_s17 = smov (%p29_p0, %s27_s17), 0  ;;  %p100_p5 = scmp.eq.s32.totalorder %s2861_s16, 1 }
   0x9   : > { %p3668_p4 = por %p94_p2, %p93_p1  ;;  %s78_s20 = ssub.s32 %s3601_s13, %s6512_s17 }
   0xa   : > { %p2864_p6 = scmp.ge.s32.totalorder %s3605_s14, 1  ;;  %p81_p7 = scmp.eq.s32.totalorder %s78_s20, 0 }
   0xb   : > { %p3675_p8 = por %p100_p5, %p99_p3  ;;  %p129_p9 = scmp.lt.s32.totalorder %s3605_s14, 3 }
   0xc   : > { %s3681_s22 = scalar_select %p81_p7, %s3593_s11, %s83_s18  }
   0xd   : > { %p130_p10 = pnand %p2864_p6, %p129_p9 }
   0xf   : > { %133 = sbr.rel (%p130_p10) target bundleno = 900 (0x384), region = 28 }
  0x16   : > { %v266_v0 = vld [vmem:[%s5952_s1] sm:$0xff]  ;;  %v267_v1 = vld [vmem:[%s5952_s1 + $0x8] sm:$0xff]  ;;  %v268_v2 = vld [vmem:[%s5952_s1 + $0x10] sm:$0xff]  ;;  %p151_p11 = scmp.lt.s32.totalorder %s3597_s12, 1  ;;  %v3607_v5 = vmov 0.0   ;;  %vm620_vm0 = vcmask 1046528  }
  0x17   : > { %v3355_v3 = vpack.c.bf16 %v267_v1, %v266_v0  ;;  %v269_v4 = vld [vmem:[%s5952_s1 + $0x18] sm:$0xff]  ;;  %3147 = vmatprep.mubr.f32.mxu0 %v3607_v5  ;;  %v270_v7 = vld [vmem:[%s5952_s1 + $0x20] sm:$0xff]  ;;  %v271_v8 = vld [vmem:[%s5952_s1 + $0x28] sm:$0xff]  ;;  %vm539_vm1 = vcmask 1040384   ;;  %s3609_s16 = smov 32   ;;  %s148_s20 = sand.u32 1, %s3589_s10  }
  0x18   : > { %v3359_v6 = vpack.c.bf16 %v269_v4, %v268_v2  ;;  %s152_s7 = scalar_select %p151_p11, %s3597_s12, 1  ;;  %v3363_v9 = vpack.c.bf16 %v271_v8, %v270_v7  ;;  %v272_v10 = vld [vmem:[%s5952_s1 + $0x30] sm:$0xff]  ;;  %v273_v11 = vld [vmem:[%s5952_s1 + $0x38] sm:$0xff]  ;;  %v274_v14 = vld [vmem:[%s5952_s1 + $0x40] sm:$0xff]  ;;  %vm2727_vm2 = vcmask 261120  }
  0x19   : > { %3356 = vmatprep.subr.bf16.mxu0 %v3355_v3  ;;  %3451 = vmatprep.subr.bf16.mxu1 %v3355_v3  ;;  %v3367_v13 = vpack.c.bf16 %v273_v11, %v272_v10  ;;  %v275_v15 = vld [vmem:[%s5952_s1 + $0x48] sm:$0xff]  ;;  %v276_v17 = vld [vmem:[%s5952_s1 + $0x50] sm:$0xff]  ;;  %v277_v18 = vld [vmem:[%s5952_s1 + $0x58] sm:$0xff]  ;;  %s2865_s23 = sshll.u32 %s148_s20, 8  ;;  %s2970_s25 = sshll.u32 %s3597_s12, 12 }
  0x1a   : > { %3358 = vmatpush3.bf16.msra.mxu0 %v3355_v3  ;;  %3459 = vmatpush3.bf16.msra.mxu1 %v3355_v3  ;;  %s2969_s8 = sshll.u32 %s152_s7, 8  ;;  %v3371_v16 = vpack.c.bf16 %v275_v15, %v274_v14  ;;  %v3375_v19 = vpack.c.bf16 %v277_v18, %v276_v17  ;;  %v278_v20 = vld [vmem:[%s5952_s1 + $0x60] sm:$0xff]  ;;  %v279_v21 = vld [vmem:[%s5952_s1 + $0x68] sm:$0xff]  ;;  %v280_v23 = vld [vmem:[%s5952_s1 + $0x70] sm:$0xff]  ;;  %s5828_s24 = scalar_lea.vmem [#allocation3], %s2865_s23 }
  0x1b   : > { %3360 = vmatprep.subr.bf16.mxu0 %v3359_v6  ;;  %3452 = vmatprep.subr.bf16.mxu1 %v3359_v6  ;;  %s3707_s18 = scalar_lea.vmem %s5951_s0, %s2969_s8  ;;  %v3379_v22 = vpack.c.bf16 %v279_v21, %v278_v20  ;;  %v281_v24 = vld [vmem:[%s5952_s1 + $0x78] sm:$0xff]  ;;  %v2900_v26 = vld [vmem:[%s5952_s1 + $0x80] sm:$0xff]  ;;  %v2901_v27 = vld [vmem:[%s5952_s1 + $0x88] sm:$0xff]  ;;  %s2777_s26 = sshll.u32 %s5828_s24, 4  ;;  %s5897_s26 = int_to_ptr.vmem [resolvable:$true] %s2777_s26 }
  0x1c   : > { %v3716_v12 = vld [vmem:[%s3707_s18 + $0x70] sm:$0xff]  ;;  %v3383_v25 = vpack.c.bf16 %v281_v24, %v280_v23  ;;  %v2948_v28 = vld [vmem:[%s5952_s1 + $0x100] sm:$0xff]  ;;  %v2949_v29 = vld [vmem:[%s5952_s1 + $0x108] sm:$0xff]  ;;  %v3387_v30 = vpack.c.bf16 %v2901_v27, %v2900_v26  ;;  %s5895_s29 = scalar_lea.hbm %s5953_s2, %s2970_s25  ;;  %s5905_s12 = scalar_lea.sflag [#allocation4], %s148_s20 }
  0x1d   : > { %3171 = vmatprep.mubr.f32.mxu1 %v3716_v12  ;;  %v3419_v31 = vpack.c.bf16 %v2949_v29, %v2948_v28  ;;  %v2902_v32 = vld [vmem:[%s5952_s1 + $0x90] sm:$0xff]  ;;  %v2903_v33 = vld [vmem:[%s5952_s1 + $0x98] sm:$0xff]  ;;  %v3771_v37 = vld [vmem:[%s3707_s18] sm:$0xff]  ;;  %s3527_s30 = scalar_lea.vmem %s5897_s26, 4096  ;;  %s3610_s3 = smov [#allocation3]  }
  0x1e   : > { %3362 = vmatpush3.bf16.msra.mxu0 %v3359_v6  ;;  %3460 = vmatpush3.bf16.msra.mxu1 %v3359_v6  ;;  %v2950_v34 = vld [vmem:[%s5952_s1 + $0x110] sm:$0xff]  ;;  %v2951_v35 = vld [vmem:[%s5952_s1 + $0x118] sm:$0xff]  ;;  %v3774_v38 = vld [vmem:[%s3707_s18 + $0x80] sm:$0xff]  ;;  %v3391_v39 = vpack.c.bf16 %v2903_v33, %v2902_v32  ;;  %p3528_p12 = scmp.ne.s32.totalorder %s5897_s26, %s3527_s30  ;;  %s3531_s4 = sshll.u32 %s3610_s3, 4  ;;  %s3532_s4 = int_to_ptr.vmem [resolvable:$false] %s3531_s4 }
  0x1f   : > { %3364 = vmatprep.subr.bf16.mxu0 %v3363_v9  ;;  %3453 = vmatprep.subr.bf16.mxu1 %v3363_v9  ;;  %v3768_v36 = vld [vmem:[%s3707_s18 + $0x78] sm:$0xff]  ;;  %v2904_v40 = vld [vmem:[%s5952_s1 + $0xa0] sm:$0xff]  ;;  %v3423_v41 = vpack.c.bf16 %v2951_v35, %v2950_v34  ;;  %v2905_v42 = vld [vmem:[%s5952_s1 + $0xa8] sm:$0xff]  ;;  %s3533_s5 = scalar_lea.vmem %s3532_s4, 8192  ;;  %p3534_p1 = scmp.lt.s32.totalorder %s5897_s26, %s3532_s4 }
  0x20   : > { %v2952_v43 = vld [vmem:[%s5952_s1 + $0x120] sm:$0xff]  ;;  %v2953_v44 = vld [vmem:[%s5952_s1 + $0x128] sm:$0xff]  ;;  %v3799_v47 = vld [vmem:[%s3707_s18 + $0x10] sm:$0xff]  ;;  %v3395_v49 = vpack.c.bf16 %v2905_v42, %v2904_v40  ;;  %p3529_p13 = pnand %p3528_p12, %p3668_p4  ;;  %p3535_p2 = scmp.lt.s32.totalorder %s3533_s5, %s3527_s30 }
  0x21   : > { %v3792_v45 = vld [vmem:[%s3707_s18 + $0x8] sm:$0xff]  ;;  %v3802_v48 = vld [vmem:[%s3707_s18 + $0x90] sm:$0xff]  ;;  %v3427_v51 = vpack.c.bf16 %v2953_v44, %v2952_v43  ;;  %v2907_v52 = vld [vmem:[%s5952_s1 + $0xb8] sm:$0xff] }
  0x22   : > { %3366 = vmatpush3.bf16.msra.mxu0 %v3363_v9  ;;  %3461 = vmatpush3.bf16.msra.mxu1 %v3363_v9  ;;  %v3796_v46 = vld [vmem:[%s3707_s18 + $0x88] sm:$0xff]  ;;  %v2906_v50 = vld [vmem:[%s5952_s1 + $0xb0] sm:$0xff]  ;;  %v2955_v54 = vld [vmem:[%s5952_s1 + $0x138] sm:$0xff]  ;;  %p3530_p0 = pneg %p3529_p13  ;;  %p3536_p3 = por %p3535_p2, %p3534_p1 }
  0x23   : > { %3368 = vmatprep.subr.bf16.mxu0 %v3367_v13  ;;  %3454 = vmatprep.subr.bf16.mxu1 %v3367_v13  ;;  %v2954_v53 = vld [vmem:[%s5952_s1 + $0x130] sm:$0xff]  ;;  %v3820_v55 = vld [vmem:[%s3707_s18 + $0x18] sm:$0xff]  ;;  %v3827_v57 = vld [vmem:[%s3707_s18 + $0x20] sm:$0xff]  ;;  %v3399_v59 = vpack.c.bf16 %v2907_v52, %v2906_v50 }
  0x24   : > { %v3824_v56 = vld [vmem:[%s3707_s18 + $0x98] sm:$0xff]  ;;  %v3830_v58 = vld [vmem:[%s3707_s18 + $0xa0] sm:$0xff]  ;;  %v3431_v61 = vpack.c.bf16 %v2955_v54, %v2954_v53  ;;  %v2909_v62 = vld [vmem:[%s5952_s1 + $0xc8] sm:$0xff]  ;;  %p3537_p5 = pnand %p3536_p3, %p3530_p0 }
  0x25   : > { %v2908_v60 = vld [vmem:[%s5952_s1 + $0xc0] sm:$0xff]  ;;  %v2957_v0 = vld [vmem:[%s5952_s1 + $0x148] sm:$0xff]  ;;  %v3855_v3 = vld [vmem:[%s3707_s18 + $0x30] sm:$0xff] }
  0x26   : > { %3370 = vmatpush3.bf16.msra.mxu0 %v3367_v13  ;;  %3462 = vmatpush3.bf16.msra.mxu1 %v3367_v13  ;;  %v2956_v63 = vld [vmem:[%s5952_s1 + $0x140] sm:$0xff]  ;;  %v3848_v1 = vld [vmem:[%s3707_s18 + $0x28] sm:$0xff]  ;;  %v3858_v4 = vld [vmem:[%s3707_s18 + $0xb0] sm:$0xff]  ;;  %v3403_v6 = vpack.c.bf16 %v2909_v62, %v2908_v60 }
  0x27   : > { %3372 = vmatprep.subr.bf16.mxu0 %v3371_v16  ;;  %3455 = vmatprep.subr.bf16.mxu1 %v3371_v16  ;;  %v3852_v2 = vld [vmem:[%s3707_s18 + $0xa8] sm:$0xff]  ;;  %v2910_v7 = vld [vmem:[%s5952_s1 + $0xd0] sm:$0xff]  ;;  %v3435_v8 = vpack.c.bf16 %v2957_v0, %v2956_v63  ;;  %v2911_v9 = vld [vmem:[%s5952_s1 + $0xd8] sm:$0xff] }
  0x28   : > { %v2958_v10 = vld [vmem:[%s5952_s1 + $0x150] sm:$0xff]  ;;  %v2959_v11 = vld [vmem:[%s5952_s1 + $0x158] sm:$0xff]  ;;  %v3883_v15 = vld [vmem:[%s3707_s18 + $0x40] sm:$0xff]  ;;  %v3407_v17 = vpack.c.bf16 %v2911_v9, %v2910_v7 }
  0x29   : > { %v3876_v13 = vld [vmem:[%s3707_s18 + $0x38] sm:$0xff]  ;;  %v2912_v18 = vld [vmem:[%s5952_s1 + $0xe0] sm:$0xff]  ;;  %v2913_v20 = vld [vmem:[%s5952_s1 + $0xe8] sm:$0xff] }
  0x2a   : > { %3374 = vmatpush3.bf16.msra.mxu0 %v3371_v16  ;;  %3463 = vmatpush3.bf16.msra.mxu1 %v3371_v16  ;;  %v3880_v14 = vld [vmem:[%s3707_s18 + $0xb8] sm:$0xff]  ;;  %v3886_v16 = vld [vmem:[%s3707_s18 + $0xc0] sm:$0xff]  ;;  %v176_v23 = vld [vmem:[%s3707_s18 + $0x48] sm:$0xff]  ;;  %v3411_v27 = vpack.c.bf16 %v2913_v20, %v2912_v18 }
  0x2b   : > { %3376 = vmatprep.subr.bf16.mxu0 %v3375_v19  ;;  %3456 = vmatprep.subr.bf16.mxu1 %v3375_v19  ;;  %v2960_v21 = vld [vmem:[%s5952_s1 + $0x160] sm:$0xff]  ;;  %v3906_v24 = vld [vmem:[%s3707_s18 + $0xc8] sm:$0xff]  ;;  %v177_v26 = vld [vmem:[%s3707_s18 + $0x50] sm:$0xff] }
  0x2c   : > { %v2914_v28 = vld [vmem:[%s5952_s1 + $0xf0] sm:$0xff]  ;;  %v2963_v32 = vld [vmem:[%s5952_s1 + $0x178] sm:$0xff]  ;;  %v3931_v35 = vld [vmem:[%s3707_s18 + $0xe0] sm:$0xff] }
  0x2d   : > { %v3927_v33 = vld [vmem:[%s3707_s18 + $0xd8] sm:$0xff]  ;;  %v3937_v42 = vld [vmem:[%s3707_s18 + $0xe8] sm:$0xff] }
  0x2e   : > { %3378 = vmatpush3.bf16.msra.mxu0 %v3375_v19  ;;  %3464 = vmatpush3.bf16.msra.mxu1 %v3375_v19  ;;  %v3439_v19 = vpack.c.bf16 %v2959_v11, %v2958_v10  ;;  %v178_v34 = vld [vmem:[%s3707_s18 + $0x58] sm:$0xff]  ;;  %v180_v43 = vld [vmem:[%s3707_s18 + $0x68] sm:$0xff] }
  0x2f   : > { %3380 = vmatprep.subr.bf16.mxu0 %v3379_v22  ;;  %3457 = vmatprep.subr.bf16.mxu1 %v3379_v22 }
  0x32   : > { %3382 = vmatpush3.bf16.msra.mxu0 %v3379_v22  ;;  %3465 = vmatpush3.bf16.msra.mxu1 %v3379_v22  ;;  %v2961_v22 = vld [vmem:[%s5952_s1 + $0x168] sm:$0xff] }
  0x33   : > { %3384 = vmatprep.subr.bf16.mxu0 %v3383_v25  ;;  %3458 = vmatprep.subr.bf16.mxu1 %v3383_v25  ;;  %v3443_v29 = vpack.c.bf16 %v2961_v22, %v2960_v21 }
  0x36   : > { %3386 = vmatpush3.bf16.msra.mxu0 %v3383_v25  ;;  %3466 = vmatpush3.bf16.msra.mxu1 %v3383_v25  ;;  %v3909_v25 = vld [vmem:[%s3707_s18 + $0xd0] sm:$0xff] }
  0x37   : > { %3388 = vmatprep.subr.bf16.mxu1 %v3387_v30  ;;  %3420 = vmatprep.subr.bf16.mxu0 %v3419_v31 }
  0x39   : > { %3148 = vmatmul.mubr.f32.vlgmr.msra.gmra.mrb[0].mxu0 %v3607_v5  ;;  %3172 = vmatmul.mubr.f32.vlgmr.msra.gmra.mrb[0].mxu1 %v3768_v36 }
  0x3a   : > { %3150 = vmatprep.mubr.f32.mxu0 %v3771_v37  ;;  %3174 = vmatprep.mubr.f32.mxu1 %v3774_v38 }
  0x3b   : > { %3390 = vmatpush3.bf16.msra.mxu1 %v3387_v30  ;;  %3422 = vmatpush3.bf16.msra.mxu0 %v3419_v31  ;;  %v2915_v30 = vld [vmem:[%s5952_s1 + $0xf8] sm:$0xff]  ;;  %v2962_v31 = vld [vmem:[%s5952_s1 + $0x170] sm:$0xff] }
  0x3c   : > { %3392 = vmatprep.subr.bf16.mxu1 %v3391_v39  ;;  %3424 = vmatprep.subr.bf16.mxu0 %v3423_v41  ;;  %v3415_v40 = vpack.c.bf16 %v2915_v30, %v2914_v28 }
  0x3d   : > { %3151 = vmatmul.mubr.f32.gmra.mrb[2].mxu0 %v3792_v45  ;;  %3175 = vmatmul.mubr.f32.gmra.mrb[2].mxu1 %v3796_v46 }
  0x3e   : > { %3153 = vmatprep.mubr.f32.mxu0 %v3799_v47  ;;  %3177 = vmatprep.mubr.f32.mxu1 %v3802_v48 }
  0x3f   : > { %3394 = vmatpush3.bf16.msra.mxu1 %v3391_v39  ;;  %3426 = vmatpush3.bf16.msra.mxu0 %v3423_v41  ;;  %v179_v39 = vld [vmem:[%s3707_s18 + $0x60] sm:$0xff]  ;;  %v3447_v41 = vpack.c.bf16 %v2963_v32, %v2962_v31 }
  0x40   : > { %3396 = vmatprep.subr.bf16.mxu1 %v3395_v49  ;;  %3428 = vmatprep.subr.bf16.mxu0 %v3427_v51 }
  0x41   : > { %3154 = vmatmul.mubr.f32.gmra.mrb[4].mxu0 %v3820_v55  ;;  %3178 = vmatmul.mubr.f32.gmra.mrb[4].mxu1 %v3824_v56 }
  0x42   : > { %3156 = vmatprep.mubr.f32.mxu0 %v3827_v57  ;;  %3180 = vmatprep.mubr.f32.mxu1 %v3830_v58 }
  0x43   : > { %3398 = vmatpush3.bf16.msra.mxu1 %v3395_v49  ;;  %3430 = vmatpush3.bf16.msra.mxu0 %v3427_v51 }
  0x44   : > { %3400 = vmatprep.subr.bf16.mxu1 %v3399_v59  ;;  %3432 = vmatprep.subr.bf16.mxu0 %v3431_v61 }
  0x45   : > { %3157 = vmatmul.mubr.f32.gmra.mrb[6].mxu0 %v3848_v1  ;;  %3181 = vmatmul.mubr.f32.gmra.mrb[6].mxu1 %v3852_v2 }
  0x46   : > { %3159 = vmatprep.mubr.f32.mxu0 %v3855_v3  ;;  %3183 = vmatprep.mubr.f32.mxu1 %v3858_v4 }
  0x47   : > { %3402 = vmatpush3.bf16.msra.mxu1 %v3399_v59  ;;  %3434 = vmatpush3.bf16.msra.mxu0 %v3431_v61 }
  0x48   : > { %3404 = vmatprep.subr.bf16.mxu1 %v3403_v6  ;;  %3436 = vmatprep.subr.bf16.mxu0 %v3435_v8 }
  0x49   : > { %3160 = vmatmul.mubr.f32.gmra.mrb[8].mxu0 %v3876_v13  ;;  %3184 = vmatmul.mubr.f32.gmra.mrb[8].mxu1 %v3880_v14 }
  0x4a   : > { %3162 = vmatprep.mubr.f32.mxu0 %v3883_v15  ;;  %3186 = vmatprep.mubr.f32.mxu1 %v3886_v16 }
  0x4b   : > { %3406 = vmatpush3.bf16.msra.mxu1 %v3403_v6  ;;  %3438 = vmatpush3.bf16.msra.mxu0 %v3435_v8 }
  0x4c   : > { %3408 = vmatprep.subr.bf16.mxu1 %v3407_v17  ;;  %3440 = vmatprep.subr.bf16.mxu0 %v3439_v19 }
  0x4d   : > { %3163 = vmatmul.mubr.f32.gmra.mrb[10].mxu0 %v176_v23  ;;  %3187 = vmatmul.mubr.f32.gmra.mrb[10].mxu1 %v3906_v24 }
  0x4e   : > { %3189 = vmatprep.mubr.f32.mxu1 %v3909_v25  ;;  %3165 = vmatprep.mubr.f32.mxu0 %v177_v26 }
  0x4f   : > { %3410 = vmatpush3.bf16.msra.mxu1 %v3407_v17  ;;  %3442 = vmatpush3.bf16.msra.mxu0 %v3439_v19 }
  0x50   : > { %3412 = vmatprep.subr.bf16.mxu1 %v3411_v27  ;;  %3444 = vmatprep.subr.bf16.mxu0 %v3443_v29 }
  0x51   : > { %3190 = vmatmul.mubr.f32.gmra.mrb[12].mxu1 %v3927_v33  ;;  %3166 = vmatmul.mubr.f32.gmra.mrb[12].mxu0 %v178_v34 }
  0x52   : > { %3192 = vmatprep.mubr.f32.mxu1 %v3931_v35  ;;  %3168 = vmatprep.mubr.f32.mxu0 %v179_v39 }
  0x53   : > { %3414 = vmatpush3.bf16.msra.mxu1 %v3411_v27  ;;  %3446 = vmatpush3.bf16.msra.mxu0 %v3443_v29 }
  0x54   : > { %3416 = vmatprep.subr.bf16.mxu1 %v3415_v40  ;;  %3448 = vmatprep.subr.bf16.mxu0 %v3447_v41 }
  0x55   : > { %3193 = vmatmul.mubr.f32.gmra.mrb[14].mxu1 %v3937_v42  ;;  %3169 = vmatmul.mubr.f32.gmra.mrb[14].mxu0 %v180_v43 }
  0x56   : > { %3227 = vmatprep.mubr.f32.mxu1 %v3771_v37  ;;  %3307 = vmatprep.mubr.f32.mxu0 %v3799_v47 }
  0x57   : > { %3418 = vmatpush3.bf16.msra.mxu1 %v3415_v40  ;;  %3450 = vmatpush3.bf16.msra.mxu0 %v3447_v41 }
  0x5a   : > { %3228 = vmatmul.mubr.f32.vlgmr.msra.gmra.mrb[16].mxu1 %v3792_v45  ;;  %3308 = vmatmul.mubr.f32.vlgmr.msra.gmra.mrb[16].mxu0 %v3820_v55 }
  0x5b   : > { %3230 = vmatprep.mubr.f32.mxu1 %v3799_v47  ;;  %3310 = vmatprep.mubr.f32.mxu0 %v3827_v57 }
  0x5e   : > { %3231 = vmatmul.mubr.f32.gmra.mrb[18].mxu1 %v3820_v55  ;;  %3311 = vmatmul.mubr.f32.gmra.mrb[18].mxu0 %v3848_v1 }
  0x5f   : > { %3233 = vmatprep.mubr.f32.mxu1 %v3827_v57  ;;  %3313 = vmatprep.mubr.f32.mxu0 %v3855_v3 }
  0x62   : > { %3234 = vmatmul.mubr.f32.gmra.mrb[20].mxu1 %v3848_v1  ;;  %3314 = vmatmul.mubr.f32.gmra.mrb[20].mxu0 %v3876_v13 }
  0x63   : > { %3236 = vmatprep.mubr.f32.mxu1 %v3855_v3  ;;  %3316 = vmatprep.mubr.f32.mxu0 %v3883_v15 }
  0x66   : > { %3237 = vmatmul.mubr.f32.gmra.mrb[22].mxu1 %v3876_v13  ;;  %3317 = vmatmul.mubr.f32.gmra.mrb[22].mxu0 %v176_v23 }
  0x67   : > { %3239 = vmatprep.mubr.f32.mxu1 %v3883_v15  ;;  %3319 = vmatprep.mubr.f32.mxu0 %v177_v26 }
  0x6a   : > { %3240 = vmatmul.mubr.f32.gmra.mrb[24].mxu1 %v176_v23  ;;  %3320 = vmatmul.mubr.f32.gmra.mrb[24].mxu0 %v178_v34 }
  0x6b   : > { %3242 = vmatprep.mubr.f32.mxu1 %v177_v26  ;;  %3322 = vmatprep.mubr.f32.mxu0 %v179_v39 }
  0x6e   : > { %3243 = vmatmul.mubr.f32.gmra.mrb[26].mxu1 %v178_v34  ;;  %3323 = vmatmul.mubr.f32.gmra.mrb[26].mxu0 %v180_v43 }
  0x6f   : > { %3245 = vmatprep.mubr.f32.mxu1 %v179_v39  ;;  %3325 = vmatprep.mubr.f32.mxu0 %v3716_v12 }
  0x72   : > { %3246 = vmatmul.mubr.f32.gmra.mrb[28].mxu1 %v180_v43  ;;  %3326 = vmatmul.mubr.f32.gmra.mrb[28].mxu0 %v3768_v36 }
  0x73   : > { %3248 = vmatprep.mubr.f32.mxu1 %v3716_v12  ;;  %3328 = vmatprep.mubr.f32.mxu0 %v3774_v38  ;;  %v197_v12 = vld [vmem:[%s3707_s18 + $0xf0] sm:$0xff] }
  0x76   : > { %3249 = vmatmul.mubr.f32.gmra.mrb[30].mxu1 %v3768_v36  ;;  %3329 = vmatmul.mubr.f32.gmra.mrb[30].mxu0 %v3796_v46  ;;  %v198_v36 = vld [vmem:[%s3707_s18 + $0xf8] sm:$0xff]  ;;  %s3608_s18 = smov 96  }
  0x77   : > { %3251 = vmatprep.mubr.f32.mxu1 %v3774_v38  ;;  %3331 = vmatprep.mubr.f32.mxu0 %v3802_v48 }
  0x7a   : > { %3252 = vmatmul.mubr.f32.gmra.mrb[32].mxu1 %v3796_v46  ;;  %3332 = vmatmul.mubr.f32.gmra.mrb[32].mxu0 %v3824_v56 }
  0x7b   : > { %3254 = vmatprep.mubr.f32.mxu1 %v3802_v48  ;;  %3334 = vmatprep.mubr.f32.mxu0 %v3830_v58 }
  0x7e   : > { %3255 = vmatmul.mubr.f32.gmra.mrb[34].mxu1 %v3824_v56  ;;  %3335 = vmatmul.mubr.f32.gmra.mrb[34].mxu0 %v3852_v2 }
  0x7f   : > { %3257 = vmatprep.mubr.f32.mxu1 %v3830_v58  ;;  %3337 = vmatprep.mubr.f32.mxu0 %v3858_v4 }
  0x82   : > { %3258 = vmatmul.mubr.f32.gmra.mrb[36].mxu1 %v3852_v2  ;;  %3338 = vmatmul.mubr.f32.gmra.mrb[36].mxu0 %v3880_v14 }
  0x83   : > { %3260 = vmatprep.mubr.f32.mxu1 %v3858_v4  ;;  %3340 = vmatprep.mubr.f32.mxu0 %v3886_v16 }
  0x86   : > { %3261 = vmatmul.mubr.f32.gmra.mrb[38].mxu1 %v3880_v14  ;;  %3341 = vmatmul.mubr.f32.gmra.mrb[38].mxu0 %v3906_v24 }
  0x87   : > { %3263 = vmatprep.mubr.f32.mxu1 %v3886_v16  ;;  %3343 = vmatprep.mubr.f32.mxu0 %v3909_v25 }
  0x8a   : > { %3264 = vmatmul.mubr.f32.gmra.mrb[40].mxu1 %v3906_v24  ;;  %3344 = vmatmul.mubr.f32.gmra.mrb[40].mxu0 %v3927_v33 }
  0x8b   : > { %3266 = vmatprep.mubr.f32.mxu1 %v3909_v25  ;;  %3346 = vmatprep.mubr.f32.mxu0 %v3931_v35 }
  0x8e   : > { %3267 = vmatmul.mubr.f32.gmra.mrb[42].mxu1 %v3927_v33  ;;  %3347 = vmatmul.mubr.f32.gmra.mrb[42].mxu0 %v3937_v42 }
  0x8f   : > { %3269 = vmatprep.mubr.f32.mxu1 %v3931_v35  ;;  %3349 = vmatprep.mubr.f32.mxu0 %v197_v12 }
  0x92   : > { %3270 = vmatmul.mubr.f32.gmra.mrb[44].mxu1 %v3937_v42  ;;  %3350 = vmatmul.mubr.f32.gmra.mrb[44].mxu0 %v198_v36 }
  0x93   : > { %3272 = vmatprep.mubr.f32.mxu1 %v197_v12  ;;  %3352 = vmatprep.mubr.f32.mxu0 %v3607_v5 }
  0x96   : > { %3273 = vmatmul.mubr.f32.gmra.mrb[46].mxu1 %v198_v36  ;;  %3353 = vmatmul.mubr.f32.gmra.mrb[46].mxu0 %v3607_v5 }
 0x10c   : > { %v3993_v37 = vpop.f32.mrb[0].mxu0  ;;  %v3995_v38 = vpop.f32.mrb[0].mxu1 }
 0x10d   : > { %v541_v44 = vrot.slane %v3993_v37, 7  ;;  %v3998_v45 = vpop.f32.mrb[1].mxu0  ;;  %v622_v46 = vrot.slane %v3993_v37, 1  ;;  %v565_v47 = vrot.slane %v3995_v38, 7  ;;  %v646_v48 = vrot.slane %v3995_v38, 1  ;;  %v4003_v49 = vpop.f32.mrb[1].mxu1 }
 0x10e   : > { %6090 = vst [vmem:[#allocation6_spill] sm:$0xff] %v3998_v45  ;;  %6091 = vst [vmem:[#allocation7_spill] sm:$0xff] %v4003_v49  ;;  %v621_v5 = vrot.slane %v3998_v45, 1  ;;  %v540_v50 = vrot.slane %v3998_v45, 7  ;;  %v564_v51 = vrot.slane %v4003_v49, 7  ;;  %v645_v53 = vrot.slane %v4003_v49, 1 }
 0x10f   : > { %v685_v52 = vsel %vm620_vm0, %v622_v46, 0.0  ;;  %v693_v55 = vsel %vm620_vm0, %v646_v48, 0.0 }
 0x110   : > { %895 = vrot.lane.b32.xlu1 %v685_v52, %s3608_s18  ;;  %v604_v54 = vsel %vm539_vm1, 0.0, %v540_v50  ;;  %v542_v56 = vsel %vm539_vm1, %v540_v50, %v541_v44  ;;  %v566_v57 = vsel %vm539_vm1, %v564_v51, %v565_v47  ;;  %v4015_v58 = vpop.f32.mrb[2].mxu0  ;;  %v4017_v59 = vpop.f32.mrb[2].mxu1  ;;  %v623_v4 = vsel %vm620_vm0, %v621_v5, %v622_v46 }
 0x111   : > { %6092 = vst [vmem:[#allocation8_spill] sm:$0xff] %v4015_v58  ;;  %6093 = vst [vmem:[#allocation9_spill] sm:$0xff] %v4017_v59  ;;  %749 = vrot.lane.b32.xlu0 %v604_v54, %s3609_s16  ;;  %v544_v60 = vrot.slane %v4015_v58, 7  ;;  %v625_v61 = vrot.slane %v4015_v58, 1  ;;  %v4022_v62 = vpop.f32.mrb[3].mxu0  ;;  %v568_v63 = vrot.slane %v4017_v59, 7  ;;  %v647_v8 = vsel %vm620_vm0, %v645_v53, %v646_v48 }
 0x112   : > { %6094 = vst [vmem:[#allocation10_spill] sm:$0xff] %v4022_v62  ;;  %v649_v0 = vrot.slane %v4017_v59, 1  ;;  %v4026_v1 = vpop.f32.mrb[3].mxu1  ;;  %v543_v2 = vrot.slane %v4022_v62, 7  ;;  %v624_v3 = vrot.slane %v4022_v62, 1  ;;  %v612_v26 = vsel %vm539_vm1, 0.0, %v564_v51 }
 0x113   : > { %6095 = vst [vmem:[#allocation11_spill] sm:$0xff] %v4026_v1  ;;  %v567_v6 = vrot.slane %v4026_v1, 7  ;;  %v648_v7 = vrot.slane %v4026_v1, 1  ;;  %v686_v31 = vsel %vm620_vm0, %v625_v61, 0.0 }
 0x114   : > { %927 = vrot.lane.b32.xlu1 %v693_v55, %s3608_s18  ;;  %v4038_v9 = vsel %vm539_vm1, %v543_v2, %v544_v60  ;;  %v4041_v10 = vsel %vm620_vm0, %v624_v3, %v625_v61  ;;  %v4043_v11 = vpop.f32.mrb[4].mxu0  ;;  %v4045_v13 = vpop.f32.mrb[4].mxu1  ;;  %v694_v50 = vsel %vm620_vm0, %v649_v0, 0.0 }
 0x115   : > { %6096 = vst [vmem:[#allocation12_spill] sm:$0xff] %v4043_v11  ;;  %6097 = vst [vmem:[#allocation13_spill] sm:$0xff] %v4045_v13  ;;  %751 = vrot.lane.b32.xlu0 %v542_v56, %s3609_s16  ;;  %v547_v14 = vrot.slane %v4043_v11, 7  ;;  %v5971_v15 = vrot.slane %v4043_v11, 1  ;;  %v4053_v16 = vsel %vm539_vm1, %v567_v6, %v568_v63  ;;  %v4055_v17 = vpop.f32.mrb[5].mxu0  ;;  %v4058_v18 = vsel %vm620_vm0, %v648_v7, %v649_v0  ;;  %v4060_v19 = vpop.f32.mrb[5].mxu1 }
 0x116   : > { %6098 = vst [vmem:[#allocation14_spill] sm:$0xff] %v4055_v17  ;;  %6099 = vst [vmem:[#allocation15_spill] sm:$0xff] %v4060_v19  ;;  %v5970_v20 = vrot.slane %v4055_v17, 7  ;;  %v627_v21 = vrot.slane %v4055_v17, 1  ;;  %v571_v22 = vrot.slane %v4045_v13, 7  ;;  %v5967_v23 = vrot.slane %v4045_v13, 1 }
 0x117   : > { %v5966_v24 = vrot.slane %v4060_v19, 7  ;;  %v651_v25 = vrot.slane %v4060_v19, 1 }
 0x118   : > { %783 = vrot.lane.b32.xlu1 %v566_v57, %s3609_s16  ;;  %v4073_v27 = vsel %vm539_vm1, %v5970_v20, %v547_v14  ;;  %v4078_v28 = vsel %vm620_vm0, %v627_v21, %v5971_v15  ;;  %v4080_v29 = vpop.f32.mrb[6].mxu0  ;;  %v4082_v30 = vpop.f32.mrb[6].mxu1  ;;  %v6116_v15 = vrot.slane %v4055_v17, 7  ;;  %v6125_v17 = vrot.slane %v4045_v13, 1 }
 0x119   : > { %6100 = vst [vmem:[#allocation16_spill] sm:$0xff] %v4080_v29  ;;  %6101 = vst [vmem:[#allocation17_spill] sm:$0xff] %v4082_v30  ;;  %781 = vrot.lane.b32.xlu0 %v612_v26, %s3609_s16  ;;  %v550_v32 = vrot.slane %v4080_v29, 7  ;;  %v5963_v33 = vrot.slane %v4080_v29, 1  ;;  %v4091_v34 = vsel %vm539_vm1, %v5966_v24, %v571_v22  ;;  %v4093_v35 = vpop.f32.mrb[7].mxu0  ;;  %v4095_v39 = vpop.f32.mrb[7].mxu1  ;;  %v4102_v42 = vsel %vm620_vm0, %v651_v25, %v5967_v23 }
 0x11a   : > { %6102 = vst [vmem:[#allocation18_spill] sm:$0xff] %v4093_v35  ;;  %v5962_v40 = vrot.slane %v4093_v35, 7  ;;  %v630_v41 = vrot.slane %v4093_v35, 1  ;;  %v574_v43 = vrot.slane %v4082_v30, 7  ;;  %v5961_v12 = vrot.slane %v4082_v30, 1 }
 0x11b   : > { %v5958_v36 = vrot.slane %v4095_v39, 7  ;;  %v654_v44 = vrot.slane %v4095_v39, 1  ;;  %v605_v22 = vsel %vm539_vm1, 0.0, %v543_v2  ;;  %v695_v49 = vsel %vm620_vm0, %v6125_v17, 0.0 }
 0x11c   : > { %899 = vrot.lane.b32.xlu1 %v686_v31, %s3608_s18  ;;  %v4112_v46 = vsel %vm539_vm1, %v5962_v40, %v550_v32  ;;  %v4117_v47 = vsel %vm620_vm0, %v630_v41, %v5963_v33  ;;  %v4119_v48 = vpop.f32.mrb[8].mxu0  ;;  %v4121_v5 = vpop.f32.mrb[8].mxu1 }
 0x11d   : > { %6103 = vst [vmem:[#allocation19_spill] sm:$0xff] %v4119_v48  ;;  %6104 = vst [vmem:[#allocation20_spill] sm:$0xff] %v4121_v5  ;;  %893 = vrot.lane.b32.xlu0 %v623_v4, %s3608_s18  ;;  %v553_v51 = vrot.slane %v4119_v48, 7  ;;  %v5957_v52 = vrot.slane %v4119_v48, 1  ;;  %v4127_v53 = vpop.f32.mrb[9].mxu0  ;;  %v4129_v54 = vpop.f32.mrb[9].mxu1  ;;  %v4134_v55 = vsel %vm539_vm1, %v5958_v36, %v574_v43  ;;  %v4141_v60 = vsel %vm620_vm0, %v654_v44, %v5961_v12 }
 0x11e   : > { %6105 = vst [vmem:[#allocation21_spill] sm:$0xff] %v4127_v53  ;;  %6106 = vst [vmem:[#allocation22_spill] sm:$0xff] %v4129_v54  ;;  %v5956_v56 = vrot.slane %v4127_v53, 7  ;;  %v633_v57 = vrot.slane %v4127_v53, 1  ;;  %v577_v61 = vrot.slane %v4121_v5, 7  ;;  %v5955_v63 = vrot.slane %v4121_v5, 1 }
 0x11f   : > { %v5954_v0 = vrot.slane %v4129_v54, 7  ;;  %v657_v3 = vrot.slane %v4129_v54, 1 }
 0x120   : > { %931 = vrot.lane.b32.xlu1 %v694_v50, %s3608_s18  ;;  %v4151_v4 = vsel %vm539_vm1, %v5956_v56, %v553_v51  ;;  %v4156_v7 = vsel %vm620_vm0, %v633_v57, %v5957_v52  ;;  %v4158_v14 = vpop.f32.mrb[10].mxu0  ;;  %v4160_v21 = vpop.f32.mrb[10].mxu1 }
 0x121   : > { %6107 = vst [vmem:[#allocation23_spill] sm:$0xff] %v4158_v14  ;;  %6108 = vst [vmem:[#allocation24_spill] sm:$0xff] %v4160_v21  ;;  %925 = vrot.lane.b32.xlu0 %v647_v8, %s3608_s18  ;;  %v556_v25 = vrot.slane %v4158_v14, 7  ;;  %v5960_v26 = vrot.slane %v4158_v14, 1  ;;  %v4168_v31 = vpop.f32.mrb[11].mxu0  ;;  %v4170_v32 = vpop.f32.mrb[11].mxu1  ;;  %v4175_v41 = vsel %vm539_vm1, %v5954_v0, %v577_v61  ;;  %v4182_v2 = vsel %vm620_vm0, %v657_v3, %v5955_v63 }
 0x122   : > { %6109 = vst [vmem:[#allocation25_spill] sm:$0xff] %v4168_v31  ;;  %v5959_v43 = vrot.slane %v4168_v31, 7  ;;  %v636_v8 = vrot.slane %v4168_v31, 1  ;;  %v580_v44 = vrot.slane %v4160_v21, 7  ;;  %v5965_v50 = vrot.slane %v4160_v21, 1 }
 0x123   : > { %v5964_v51 = vrot.slane %v4170_v32, 7  ;;  %v660_v57 = vrot.slane %v4170_v32, 1  ;;  %v613_v61 = vsel %vm539_vm1, 0.0, %v567_v6 }
 0x124   : > { %753 = vrot.lane.b32.xlu1 %v605_v22, %s3609_s16  ;;  %v4195_v0 = vsel %vm539_vm1, %v5959_v43, %v556_v25  ;;  %v4200_v3 = vsel %vm620_vm0, %v636_v8, %v5960_v26  ;;  %v4202_v63 = vpop.f32.mrb[12].mxu0  ;;  %v4204_v56 = vpop.f32.mrb[12].mxu1 }
 0x125   : > { %6110 = vst [vmem:[#allocation26_spill] sm:$0xff] %v4204_v56  ;;  %785 = vrot.lane.b32.xlu0 %v613_v61, %s3609_s16  ;;  %v559_v22 = vrot.slane %v4202_v63, 7  ;;  %v5969_v6 = vrot.slane %v4202_v63, 1  ;;  %v4209_v52 = vpop.f32.mrb[13].mxu0  ;;  %v4211_v36 = vpop.f32.mrb[13].mxu1  ;;  %v4216_v25 = vsel %vm539_vm1, %v5964_v51, %v580_v44  ;;  %v4223_v61 = vsel %vm620_vm0, %v660_v57, %v5965_v50 }
 0x126   : > { %v5968_v8 = vrot.slane %v4209_v52, 7  ;;  %v639_v43 = vrot.slane %v4209_v52, 1  ;;  %v583_v26 = vrot.slane %v4204_v56, 7  ;;  %v5974_v12 = vrot.slane %v4204_v56, 1 }
 0x127   : > { %v5973_v40 = vrot.slane %v4211_v36, 7  ;;  %v663_v33 = vrot.slane %v4211_v36, 1 }
 0x128   : > { %755 = vrot.lane.b32.xlu1 %v4038_v9, %s3609_s16  ;;  %v4234_v44 = vsel %vm539_vm1, %v5968_v8, %v559_v22  ;;  %v4239_v57 = vsel %vm620_vm0, %v639_v43, %v5969_v6  ;;  %v4241_v51 = vpop.f32.mrb[14].mxu0  ;;  %v4243_v50 = vpop.f32.mrb[14].mxu1  ;;  %v6115_v43 = vrot.slane %v4043_v11, 1 }
 0x129   : > { %6111 = vst [vmem:[#allocation27_spill] sm:$0xff] %v4241_v51  ;;  %6112 = vst [vmem:[#allocation28_spill] sm:$0xff] %v4243_v50  ;;  %897 = vrot.lane.b32.xlu0 %v4041_v10, %s3608_s18  ;;  %v562_v24 = vrot.slane %v4241_v51, 7  ;;  %v4249_v23 = vpop.f32.mrb[15].mxu0  ;;  %v4251_v22 = vpop.f32.mrb[15].mxu1  ;;  %v586_v8 = vrot.slane %v4243_v50, 7  ;;  %v4258_v6 = vsel %vm539_vm1, %v5973_v40, %v583_v26  ;;  %v4267_v59 = vsel %vm620_vm0, %v663_v33, %v5974_v12 }
 0x12a   : > { %6113 = vst [vmem:[#allocation29_spill] sm:$0xff] %v4249_v23  ;;  %6114 = vst [vmem:[#allocation30_spill] sm:$0xff] %v4251_v22  ;;  %v5977_v20 = vrot.slane %v4249_v23, 7  ;;  %v642_v10 = vrot.slane %v4249_v23, 1  ;;  %v666_v9 = vrot.slane %v4251_v22, 1  ;;  %v687_v26 = vsel %vm620_vm0, %v6115_v43, 0.0 }
 0x12b   : > { %v606_v33 = vsel %vm539_vm1, 0.0, %v6116_v15  ;;  %v6119_v43 = vrot.slane %v4251_v22, 7 }
 0x12c   : > { %787 = vrot.lane.b32.xlu1 %v4053_v16, %s3609_s16  ;;  %v4277_v40 = vsel %vm539_vm1, %v5977_v20, %v562_v24  ;;  %v6118_v16 = vrot.slane %v4241_v51, 1  ;;  %v6121_v24 = vrot.slane %v4243_v50, 1 }
 0x12d   : > { %929 = vrot.lane.b32.xlu0 %v4058_v18, %s3608_s18  ;;  %v4284_v12 = vpop.f32.mrb[16].mxu1  ;;  %v4294_v1 = vsel %vm539_vm1, %v6119_v43, %v586_v8  ;;  %v4301_v20 = vpop.f32.mrb[16].mxu0 }
 0x12e   : > { %6117 = vst [vmem:[#allocation31_spill] sm:$0xff] %v4284_v12  ;;  %v4289_v11 = vsel %vm620_vm0, %v642_v10, %v6118_v16  ;;  %6120 = vst [vmem:[#allocation32_spill] sm:$0xff] %v4294_v1  ;;  %v4299_v18 = vsel %vm620_vm0, %v666_v9, %v6121_v24  ;;  %v1331_v15 = vrot.slane %v4284_v12, 7  ;;  %v4305_v58 = vpop.f32.mrb[17].mxu1  ;;  %v2120_v10 = vrot.slane %v4301_v20, 7  ;;  %v4309_v62 = vpop.f32.mrb[17].mxu0 }
 0x12f   : > { %6122 = vst [vmem:[#allocation33_spill] sm:$0xff] %v4299_v18  ;;  %6123 = vst [vmem:[#allocation34_spill] sm:$0xff] %v4301_v20  ;;  %v1410_v43 = vrot.slane %v4305_v58, 1  ;;  %v2199_v24 = vrot.slane %v4309_v62, 1  ;;  %v6126_v16 = vrot.slane %v4060_v19, 7  ;;  %v6128_v8 = vrot.slane %v4284_v12, 1 }
 0x130   : > { %6124 = vst [vmem:[#allocation35_spill] sm:$0xff] %v4309_v62  ;;  %903 = vrot.lane.b32.xlu1 %v687_v26, %s3608_s18  ;;  %v6130_v1 = vrot.slane %v4305_v58, 7 }
 0x131   : > { %757 = vrot.lane.b32.xlu0 %v606_v33, %s3609_s16  ;;  %v614_v45 = vsel %vm539_vm1, 0.0, %v6126_v16  ;;  %v4323_v18 = vpop.f32.mrb[18].mxu1  ;;  %v4328_v9 = vsel %vm620_vm0, %v1410_v43, %v6128_v8  ;;  %v4335_v33 = vpop.f32.mrb[18].mxu0  ;;  %v6132_v16 = vrot.slane %v4309_v62, 7  ;;  %v6134_v8 = vrot.slane %v4301_v20, 1 }
 0x132   : > { %6127 = vst [vmem:[#allocation36_spill] sm:$0xff] %v4323_v18  ;;  %6129 = vst [vmem:[#allocation37_spill] sm:$0xff] %v4328_v9  ;;  %v4333_v26 = vsel %vm539_vm1, %v6130_v1, %v1331_v15  ;;  %v1334_v17 = vrot.slane %v4323_v18, 7  ;;  %v4339_v19 = vpop.f32.mrb[19].mxu1  ;;  %v4351_v1 = vpop.f32.mrb[19].mxu0  ;;  %v2123_v13 = vrot.slane %v4335_v33, 7 }
 0x133   : > { %6131 = vst [vmem:[#allocation38_spill] sm:$0xff] %v4333_v26  ;;  %v4344_v12 = vsel %vm539_vm1, %v6132_v16, %v2120_v10  ;;  %v4349_v43 = vsel %vm620_vm0, %v2199_v24, %v6134_v8  ;;  %6136 = vst [vmem:[#allocation41_spill] sm:$0xff] %v4351_v1  ;;  %v1413_v26 = vrot.slane %v4339_v19, 1  ;;  %v2202_v16 = vrot.slane %v4351_v1, 1 }
 0x134   : > { %6133 = vst [vmem:[#allocation39_spill] sm:$0xff] %v4344_v12  ;;  %6135 = vst [vmem:[#allocation40_spill] sm:$0xff] %v4349_v43  ;;  %935 = vrot.lane.b32.xlu1 %v695_v49, %s3608_s18  ;;  %v6137_v8 = vrot.slane %v4323_v18, 1  ;;  %v6139_v43 = vrot.slane %v4339_v19, 7 }
 0x135   : > { %789 = vrot.lane.b32.xlu0 %v614_v45, %s3609_s16  ;;  %v4361_v24 = vpop.f32.mrb[20].mxu1  ;;  %v4373_v9 = vpop.f32.mrb[20].mxu0  ;;  %v6142_v45 = vrot.slane %v4351_v1, 7 }
 0x136   : > { %v4366_v15 = vsel %vm620_vm0, %v1413_v26, %v6137_v8  ;;  %v4371_v12 = vsel %vm539_vm1, %v6139_v43, %v1334_v17  ;;  %6141 = vst [vmem:[#allocation44_spill] sm:$0xff] %v4373_v9  ;;  %v1337_v49 = vrot.slane %v4361_v24, 7  ;;  %v4377_v62 = vpop.f32.mrb[21].mxu1  ;;  %v4384_v26 = vpop.f32.mrb[21].mxu0  ;;  %v6145_v43 = vrot.slane %v4335_v33, 1 }
 0x137   : > { %6138 = vst [vmem:[#allocation42_spill] sm:$0xff] %v4366_v15  ;;  %6140 = vst [vmem:[#allocation43_spill] sm:$0xff] %v4371_v12  ;;  %v4382_v18 = vsel %vm539_vm1, %v6142_v45, %v2123_v13  ;;  %v1416_v17 = vrot.slane %v4377_v62, 1  ;;  %v2126_v10 = vrot.slane %v4373_v9, 7  ;;  %v5993_v13 = vrot.slane %v4384_v26, 7 }
 0x138   : > { %6143 = vst [vmem:[#allocation45_spill] sm:$0xff] %v4382_v18  ;;  %6144 = vst [vmem:[#allocation46_spill] sm:$0xff] %v4384_v26  ;;  %v4391_v12 = vsel %vm620_vm0, %v2202_v16, %v6145_v43  ;;  %759 = vrot.lane.b32.xlu1 %v4073_v27, %s3609_s16  ;;  %v2205_v45 = vrot.slane %v4384_v26, 1  ;;  %v6148_v18 = vrot.slane %v4361_v24, 1  ;;  %v6149_v43 = vrot.slane %v4377_v62, 7 }
 0x139   : > { %6146 = vst [vmem:[#allocation47_spill] sm:$0xff] %v4391_v12  ;;  %901 = vrot.lane.b32.xlu0 %v4078_v28, %s3608_s18  ;;  %v4401_v8 = vpop.f32.mrb[22].mxu1  ;;  %v4418_v12 = vsel %vm539_vm1, %v5993_v13, %v2126_v10  ;;  %v6151_v28 = vrot.slane %v4373_v9, 1 }
 0x13a   : > { %6147 = vst [vmem:[#allocation48_spill] sm:$0xff] %v4401_v8  ;;  %v4406_v16 = vsel %vm620_vm0, %v1416_v17, %v6148_v18  ;;  %v4411_v27 = vsel %vm539_vm1, %v6149_v43, %v1337_v49  ;;  %v4413_v1 = vpop.f32.mrb[23].mxu1  ;;  %6150 = vst [vmem:[#allocation49_spill] sm:$0xff] %v4418_v12  ;;  %v6153_v18 = vrot.slane %v4080_v29, 1  ;;  %v1340_v17 = vrot.slane %v4401_v8, 7  ;;  %v4450_v43 = vpop.f32.mrb[22].mxu0 }
 0x13b   : > { %v4423_v15 = vsel %vm620_vm0, %v2205_v45, %v6151_v28  ;;  %v1419_v13 = vrot.slane %v4413_v1, 1  ;;  %v6155_v28 = vrot.slane %v4093_v35, 7  ;;  %6157 = vst [vmem:[#allocation52_spill] sm:$0xff] %v4450_v43  ;;  %v6158_v12 = vrot.slane %v4401_v8, 1  ;;  %v4468_v26 = vpop.f32.mrb[23].mxu0 }
 0x13c   : > { %6152 = vst [vmem:[#allocation50_spill] sm:$0xff] %v4423_v15  ;;  %791 = vrot.lane.b32.xlu1 %v4091_v34, %s3609_s16  ;;  %v688_v49 = vsel %vm620_vm0, %v6153_v18, 0.0  ;;  %6163 = vst [vmem:[#allocation55_spill] sm:$0xff] %v4468_v26  ;;  %v6002_v8 = vrot.slane %v4450_v43, 1 }
 0x13d   : > { %933 = vrot.lane.b32.xlu0 %v4102_v42, %s3608_s18  ;;  %v4436_v45 = vpop.f32.mrb[24].mxu1  ;;  %v607_v34 = vsel %vm539_vm1, 0.0, %v6155_v28  ;;  %v6156_v42 = vrot.slane %v4082_v30, 1  ;;  %v4455_v29 = vsel %vm620_vm0, %v1419_v13, %v6158_v12  ;;  %v6160_v28 = vrot.slane %v4413_v1, 7 }
 0x13e   : > { %6154 = vst [vmem:[#allocation51_spill] sm:$0xff] %v4436_v45  ;;  %v4441_v15 = vpop.f32.mrb[25].mxu1  ;;  %6159 = vst [vmem:[#allocation53_spill] sm:$0xff] %v4455_v29  ;;  %v6001_v12 = vrot.slane %v4468_v26, 7  ;;  %v2208_v13 = vrot.slane %v4468_v26, 1  ;;  %v6175_v26 = vrot.slane %v4436_v45, 1 }
 0x13f   : > { %v696_v18 = vsel %vm620_vm0, %v6156_v42, 0.0  ;;  %v4460_v35 = vsel %vm539_vm1, %v6160_v28, %v1340_v17  ;;  %v2129_v42 = vrot.slane %v4450_v43, 7 }
 0x140   : > { %907 = vrot.lane.b32.xlu1 %v688_v49, %s3608_s18  ;;  %6161 = vst [vmem:[#allocation54_spill] sm:$0xff] %v4460_v35  ;;  %v6162_v49 = vrot.slane %v4095_v39, 7  ;;  %v4487_v35 = vsel %vm620_vm0, %v2208_v13, %v6002_v8  ;;  %v1343_v13 = vrot.slane %v4436_v45, 7  ;;  %v1422_v8 = vrot.slane %v4441_v15, 1 }
 0x141   : > { %761 = vrot.lane.b32.xlu0 %v607_v34, %s3609_s16  ;;  %v4448_v10 = vpop.f32.mrb[26].mxu1  ;;  %6166 = vst [vmem:[#allocation58_spill] sm:$0xff] %v4487_v35 }
 0x142   : > { %v615_v34 = vsel %vm539_vm1, 0.0, %v6162_v49  ;;  %v4465_v30 = vpop.f32.mrb[27].mxu1  ;;  %v4482_v49 = vsel %vm539_vm1, %v6001_v12, %v2129_v42  ;;  %v6169_v42 = vrot.slane %v4119_v48, 1 }
 0x143   : > { %6165 = vst [vmem:[#allocation57_spill] sm:$0xff] %v4482_v49  ;;  %v6171_v49 = vrot.slane %v4127_v53, 7  ;;  %v4527_v53 = vsel %vm620_vm0, %v1422_v8, %v6175_v26 }
 0x144   : > { %939 = vrot.lane.b32.xlu1 %v696_v18, %s3608_s18  ;;  %v689_v12 = vsel %vm620_vm0, %v6169_v42, 0.0  ;;  %6176 = vst [vmem:[#allocation64_spill] sm:$0xff] %v4527_v53 }
 0x145   : > { %793 = vrot.lane.b32.xlu0 %v615_v34, %s3609_s16  ;;  %v4475_v17 = vpop.f32.mrb[28].mxu1 }
 0x146   : > { %v4477_v28 = vpop.f32.mrb[29].mxu1 }
 0x147   : > { %6164 = vst [vmem:[#allocation56_spill] sm:$0xff] %v4477_v28 }
 0x148   : > { %763 = vrot.lane.b32.xlu1 %v4112_v46, %s3609_s16 }
 0x149   : > { %905 = vrot.lane.b32.xlu0 %v4117_v47, %s3608_s18  ;;  %v4493_v18 = vpop.f32.mrb[30].mxu1  ;;  %v4522_v47 = vpop.f32.mrb[24].mxu0 }
 0x14a   : > { %6167 = vst [vmem:[#allocation59_spill] sm:$0xff] %v4493_v18  ;;  %v4495_v34 = vpop.f32.mrb[31].mxu1  ;;  %6174 = vst [vmem:[#allocation63_spill] sm:$0xff] %v4522_v47  ;;  %v4540_v43 = vpop.f32.mrb[25].mxu0  ;;  %v6013_v45 = vrot.slane %v4522_v47, 1 }
 0x14b   : > { %6168 = vst [vmem:[#allocation60_spill] sm:$0xff] %v4495_v34  ;;  %6180 = vst [vmem:[#allocation66_spill] sm:$0xff] %v4540_v43  ;;  %v6012_v26 = vrot.slane %v4540_v43, 7  ;;  %v2211_v8 = vrot.slane %v4540_v43, 1  ;;  %v6186_v43 = vrot.slane %v4448_v10, 1 }
 0x14c   : > { %795 = vrot.lane.b32.xlu1 %v4134_v55, %s3609_s16  ;;  %v608_v55 = vsel %vm539_vm1, 0.0, %v6171_v49  ;;  %v6177_v49 = vrot.slane %v4441_v15, 7 }
 0x14d   : > { %937 = vrot.lane.b32.xlu0 %v4141_v60, %s3608_s18  ;;  %v4508_v35 = vpop.f32.mrb[32].mxu1  ;;  %v6173_v60 = vrot.slane %v4121_v5, 1 }
 0x14e   : > { %6170 = vst [vmem:[#allocation61_spill] sm:$0xff] %v4508_v35  ;;  %v4513_v48 = vpop.f32.mrb[33].mxu1  ;;  %v4532_v29 = vsel %vm539_vm1, %v6177_v49, %v1343_v13 }
 0x14f   : > { %6172 = vst [vmem:[#allocation62_spill] sm:$0xff] %v4513_v48  ;;  %v697_v42 = vsel %vm620_vm0, %v6173_v60, 0.0  ;;  %6178 = vst [vmem:[#allocation65_spill] sm:$0xff] %v4532_v29  ;;  %v2132_v60 = vrot.slane %v4522_v47, 7  ;;  %v4559_v29 = vsel %vm620_vm0, %v2211_v8, %v6013_v45  ;;  %v1346_v8 = vrot.slane %v4448_v10, 7 }
 0x150   : > { %911 = vrot.lane.b32.xlu1 %v689_v12, %s3608_s18  ;;  %v6179_v12 = vrot.slane %v4129_v54, 7  ;;  %6182 = vst [vmem:[#allocation68_spill] sm:$0xff] %v4559_v29  ;;  %v1425_v45 = vrot.slane %v4465_v30, 1 }
 0x151   : > { %765 = vrot.lane.b32.xlu0 %v608_v55, %s3609_s16  ;;  %v4520_v46 = vpop.f32.mrb[34].mxu1 }
 0x152   : > { %v616_v55 = vsel %vm539_vm1, 0.0, %v6179_v12  ;;  %v4537_v5 = vpop.f32.mrb[35].mxu1  ;;  %v4554_v12 = vsel %vm539_vm1, %v6012_v26, %v2132_v60  ;;  %v6183_v60 = vrot.slane %v4158_v14, 1 }
 0x153   : > { %6181 = vst [vmem:[#allocation67_spill] sm:$0xff] %v4554_v12  ;;  %v6184_v12 = vrot.slane %v4168_v31, 7  ;;  %v4599_v31 = vsel %vm620_vm0, %v1425_v45, %v6186_v43 }
 0x154   : > { %943 = vrot.lane.b32.xlu1 %v697_v42, %s3608_s18  ;;  %v690_v26 = vsel %vm620_vm0, %v6183_v60, 0.0 }
 0x155   : > { %797 = vrot.lane.b32.xlu0 %v616_v55, %s3609_s16  ;;  %v4547_v13 = vpop.f32.mrb[36].mxu1 }
 0x156   : > { %v4549_v49 = vpop.f32.mrb[37].mxu1 }
 0x158   : > { %767 = vrot.lane.b32.xlu1 %v4151_v4, %s3609_s16 }
 0x159   : > { %909 = vrot.lane.b32.xlu0 %v4156_v7, %s3608_s18  ;;  %v4565_v42 = vpop.f32.mrb[38].mxu1  ;;  %v4594_v7 = vpop.f32.mrb[26].mxu0 }
 0x15a   : > { %v4567_v55 = vpop.f32.mrb[39].mxu1  ;;  %v4613_v54 = vpop.f32.mrb[27].mxu0 }
 0x15b   : > { %v6022_v43 = vrot.slane %v4613_v54, 7  ;;  %v2214_v45 = vrot.slane %v4613_v54, 1 }
 0x15c   : > { %799 = vrot.lane.b32.xlu1 %v4175_v41, %s3609_s16  ;;  %v609_v41 = vsel %vm539_vm1, 0.0, %v6184_v12  ;;  %v6187_v12 = vrot.slane %v4465_v30, 7 }
 0x15d   : > { %941 = vrot.lane.b32.xlu0 %v4182_v2, %s3608_s18  ;;  %v4580_v29 = vpop.f32.mrb[40].mxu1  ;;  %v6185_v2 = vrot.slane %v4160_v21, 1  ;;  %v6023_v21 = vrot.slane %v4594_v7, 1 }
 0x15e   : > { %v4585_v14 = vpop.f32.mrb[41].mxu1  ;;  %v4604_v53 = vsel %vm539_vm1, %v6187_v12, %v1346_v8 }
 0x15f   : > { %v698_v60 = vsel %vm620_vm0, %v6185_v2, 0.0  ;;  %v2135_v2 = vrot.slane %v4594_v7, 7  ;;  %v4627_v12 = vsel %vm620_vm0, %v2214_v45, %v6023_v21  ;;  %v6027_v45 = vrot.slane %v4477_v28, 7 }
 0x160   : > { %915 = vrot.lane.b32.xlu1 %v690_v26, %s3608_s18  ;;  %v6188_v26 = vrot.slane %v4170_v32, 7  ;;  %6189 = vst [vmem:[#allocation69_spill] sm:$0xff] %v4627_v12 }
 0x161   : > { %769 = vrot.lane.b32.xlu0 %v609_v41, %s3609_s16  ;;  %v4592_v4 = vpop.f32.mrb[42].mxu1  ;;  %v4622_v8 = vsel %vm539_vm1, %v6022_v43, %v2135_v2  ;;  %v6028_v2 = vrot.slane %v4475_v17, 1 }
 0x162   : > { %v617_v41 = vsel %vm539_vm1, 0.0, %v6188_v26  ;;  %v4611_v47 = vpop.f32.mrb[43].mxu1 }
 0x164   : > { %947 = vrot.lane.b32.xlu1 %v698_v60, %s3608_s18  ;;  %v6190_v60 = vrot.slane %v4202_v63, 1 }
 0x165   : > { %801 = vrot.lane.b32.xlu0 %v617_v41, %s3609_s16  ;;  %v1349_v41 = vrot.slane %v4475_v17, 7 }
 0x166   : > { %v691_v26 = vsel %vm620_vm0, %v6190_v60, 0.0  ;;  %v4652_v60 = vpop.f32.mrb[44].mxu1 }
 0x167   : > { %v4657_v21 = vsel %vm539_vm1, %v6027_v45, %v1349_v41  ;;  %v1431_v41 = vrot.slane %v4495_v34, 1 }
 0x168   : > { %771 = vrot.lane.b32.xlu1 %v4195_v0, %s3609_s16  ;;  %v1428_v0 = vrot.slane %v4477_v28, 1 }
 0x169   : > { %913 = vrot.lane.b32.xlu0 %v4200_v3, %s3608_s18  ;;  %v6191_v3 = vrot.slane %v4209_v52, 7 }
 0x16a   : > { %v4662_v12 = vsel %vm620_vm0, %v1428_v0, %v6028_v2  ;;  %v6030_v2 = vrot.slane %v4495_v34, 7 }
 0x16b   : > { %v610_v43 = vsel %vm539_vm1, 0.0, %v6191_v3  ;;  %6193 = vst [vmem:[#allocation70_spill] sm:$0xff] %v4662_v12  ;;  %v4667_v3 = vpop.f32.mrb[45].mxu1 }
 0x16c   : > { %803 = vrot.lane.b32.xlu1 %v4216_v25, %s3609_s16  ;;  %v6192_v25 = vrot.slane %v4204_v56, 1  ;;  %v4669_v56 = vpop.f32.mrb[28].mxu0 }
 0x16d   : > { %945 = vrot.lane.b32.xlu0 %v4223_v61, %s3608_s18  ;;  %6195 = vst [vmem:[#allocation71_spill] sm:$0xff] %v4669_v56  ;;  %v4673_v28 = vpop.f32.mrb[29].mxu0  ;;  %v6196_v12 = vrot.slane %v4669_v56, 1 }
 0x16e   : > { %v699_v61 = vsel %vm620_vm0, %v6192_v25, 0.0  ;;  %v2138_v25 = vrot.slane %v4669_v56, 7  ;;  %v6029_v0 = vrot.slane %v4673_v28, 7  ;;  %v2217_v45 = vrot.slane %v4673_v28, 1 }
 0x170   : > { %919 = vrot.lane.b32.xlu1 %v691_v26, %s3608_s18  ;;  %v6194_v26 = vrot.slane %v4211_v36, 7 }
 0x171   : > { %773 = vrot.lane.b32.xlu0 %v610_v43, %s3609_s16 }
 0x172   : > { %v618_v43 = vsel %vm539_vm1, 0.0, %v6194_v26  ;;  %v1352_v26 = vrot.slane %v4493_v18, 7 }
 0x174   : > { %951 = vrot.lane.b32.xlu1 %v699_v61, %s3608_s18  ;;  %v4685_v61 = vsel %vm539_vm1, %v6029_v0, %v2138_v25  ;;  %v6198_v25 = vrot.slane %v4241_v51, 1  ;;  %v4707_v0 = vsel %vm539_vm1, %v6030_v2, %v1352_v26  ;;  %v4724_v26 = vpop.f32.mrb[46].mxu1 }
 0x175   : > { %805 = vrot.lane.b32.xlu0 %v618_v43, %s3609_s16  ;;  %v6031_v43 = vrot.slane %v4493_v18, 1  ;;  %6199 = vst [vmem:[#allocation73_spill] sm:$0xff] %v4707_v0  ;;  %v4735_v0 = vpop.f32.mrb[47].mxu1 }
 0x178   : > { %775 = vrot.lane.b32.xlu1 %v4234_v44, %s3609_s16  ;;  %v4695_v44 = vsel %vm620_vm0, %v2217_v45, %v6196_v12  ;;  %v4712_v12 = vsel %vm620_vm0, %v1431_v41, %v6031_v43  ;;  %v6201_v45 = vrot.slane %v4249_v23, 7  ;;  %v6204_v41 = vrot.slane %v4251_v22, 7 }
 0x179   : > { %917 = vrot.lane.b32.xlu0 %v4239_v57, %s3608_s18  ;;  %6197 = vst [vmem:[#allocation72_spill] sm:$0xff] %v4695_v44  ;;  %v692_v57 = vsel %vm620_vm0, %v6198_v25, 0.0  ;;  %6200 = vst [vmem:[#allocation74_spill] sm:$0xff] %v4712_v12  ;;  %v4722_v44 = vpop.f32.mrb[30].mxu0 }
 0x17a   : > { %6203 = vst [vmem:[#allocation75_spill] sm:$0xff] %v4722_v44  ;;  %v619_v43 = vsel %vm539_vm1, 0.0, %v6204_v41  ;;  %v2141_v56 = vrot.slane %v4722_v44, 7  ;;  %v6045_v41 = vrot.slane %v4513_v48, 7  ;;  %v6206_v34 = vrot.slane %v4722_v44, 1 }
 0x17c   : > { %807 = vrot.lane.b32.xlu1 %v4258_v6, %s3609_s16  ;;  %v611_v6 = vsel %vm539_vm1, 0.0, %v6201_v45  ;;  %v1434_v45 = vrot.slane %v4513_v48, 1 }
 0x17d   : > { %949 = vrot.lane.b32.xlu0 %v4267_v59, %s3608_s18  ;;  %v6202_v59 = vrot.slane %v4243_v50, 1  ;;  %v1355_v50 = vrot.slane %v4508_v35, 7 }
 0x17f   : > { %v700_v25 = vsel %vm620_vm0, %v6202_v59, 0.0 }
 0x180   : > { %923 = vrot.lane.b32.xlu1 %v692_v57, %s3608_s18  ;;  %v4731_v57 = vpop.f32.mrb[31].mxu0 }
 0x181   : > { %777 = vrot.lane.b32.xlu0 %v611_v6, %s3609_s16  ;;  %v6042_v12 = vrot.slane %v4731_v57, 7  ;;  %v2220_v59 = vrot.slane %v4731_v57, 1 }
 0x182   : > { %v896_v2 = vpop.permute.xlu1 %895 }
 0x183   : > { %v750_v6 = vpop.permute.xlu0 %749  ;;  %v4746_v51 = vsel %vm539_vm1, %v6042_v12, %v2141_v56  ;;  %v4751_v23 = vsel %vm620_vm0, %v2220_v59, %v6206_v34  ;;  %v4761_v56 = vsel %vm539_vm1, %v6045_v41, %v1355_v50  ;;  %v6214_v50 = vld [vmem:[#allocation33_spill] sm:$0xff] }
 0x184   : > { %955 = vrot.lane.b32.xlu1 %v700_v25, %s3608_s18  ;;  %6205 = vst [vmem:[#allocation76_spill] sm:$0xff] %v4746_v51  ;;  %6207 = vst [vmem:[#allocation77_spill] sm:$0xff] %v4751_v23  ;;  %v6212_v23 = vld [vmem:[#allocation31_spill] sm:$0xff] }
 0x185   : > { %809 = vrot.lane.b32.xlu0 %v619_v43, %s3609_s16  ;;  %6208 = vst [vmem:[#allocation78_spill] sm:$0xff] %v4761_v56  ;;  %v6209_v43 = vrot.slane %v4508_v35, 1  ;;  %v6215_v41 = vrot.slane %v6212_v23, 1  ;;  %v1358_v56 = vrot.slane %v4520_v46, 7 }
 0x186   : > { %v928_v25 = vpop.permute.xlu1 %927 }
 0x187   : > { %v752_v18 = vpop.permute.xlu0 %751  ;;  %v4766_v34 = vsel %vm620_vm0, %v1434_v45, %v6209_v43  ;;  %v1474_v45 = vsel %vm620_vm0, %v6215_v41, 0.0  ;;  %v4779_v43 = vpop.f32.mrb[32].mxu0 }
 0x188   : > { %v846_v22 = vadd.f32 %v3993_v37, %v752_v18  ;;  %779 = vrot.lane.b32.xlu1 %v4277_v40, %s3609_s16  ;;  %6210 = vst [vmem:[#allocation79_spill] sm:$0xff] %v4766_v34  ;;  %v6211_v40 = vld [vmem:[#allocation32_spill] sm:$0xff]  ;;  %6216 = vst [vmem:[#allocation31_spill] sm:$0xff] %v4779_v43 }
 0x189   : > { %921 = vrot.lane.b32.xlu0 %v4289_v11, %s3608_s18 }
 0x18a   : > { %v990_v59 = vadd.f32 %v896_v2, %v846_v22  ;;  %v784_v12 = vpop.permute.xlu1 %783  ;;  %v6217_v22 = vld [vmem:[#allocation6_spill] sm:$0xff] }
 0x18b   : > { %v862_v37 = vadd.f32 %v3995_v38, %v784_v12  ;;  %v782_v18 = vpop.permute.xlu0 %781  ;;  %v845_v2 = vadd.f32 %v750_v6, %v6217_v22  ;;  %v6218_v12 = vrot.slane %v4305_v58, 7  ;;  %v6221_v22 = vrot.slane %v4301_v20, 1 }
 0x18c   : > { %811 = vrot.lane.b32.xlu1 %v6211_v40, %s3609_s16  ;;  %v4772_v11 = vadd.f32 %v6212_v23, %v990_v59  ;;  %v2144_v59 = vrot.slane %v4779_v43, 7 }
 0x18d   : > { %v1006_v44 = vadd.f32 %v928_v25, %v862_v37  ;;  %953 = vrot.lane.b32.xlu0 %v6214_v50, %s3608_s18  ;;  %v1394_v40 = vsel %vm539_vm1, 0.0, %v6218_v12  ;;  %v4787_v37 = vpop.f32.mrb[33].mxu0  ;;  %v2263_v12 = vsel %vm620_vm0, %v6221_v22, 0.0  ;;  %v6226_v22 = vld [vmem:[#allocation7_spill] sm:$0xff] }
 0x18e   : > { %6213 = vst [vmem:[#allocation32_spill] sm:$0xff] %v4772_v11  ;;  %v900_v38 = vpop.permute.xlu1 %899  ;;  %6219 = vst [vmem:[#allocation33_spill] sm:$0xff] %v4787_v37  ;;  %v2223_v41 = vrot.slane %v4787_v37, 1  ;;  %v1437_v11 = vrot.slane %v4537_v5, 1 }
 0x18f   : > { %v894_v50 = vpop.permute.xlu0 %893  ;;  %v4792_v34 = vadd.f32 %v4508_v35, %v1006_v44  ;;  %v6222_v44 = vrot.slane %v4787_v37, 7  ;;  %v6228_v37 = vld [vmem:[#allocation37_spill] sm:$0xff] }
 0x190   : > { %v989_v6 = vadd.f32 %v894_v50, %v845_v2  ;;  %1684 = vrot.lane.b32.xlu1 %v1474_v45, %s3608_s18  ;;  %v6224_v45 = vrot.slane %v4779_v43, 1 }
 0x191   : > { %6220 = vst [vmem:[#allocation6_spill] sm:$0xff] %v4792_v34  ;;  %1538 = vrot.lane.b32.xlu0 %v1394_v40, %s3609_s16  ;;  %v4806_v2 = vsel %vm539_vm1, %v6222_v44, %v2144_v59  ;;  %v861_v34 = vadd.f32 %v782_v18, %v6226_v22  ;;  %v6229_v59 = vrot.slane %v4537_v5, 7 }
 0x192   : > { %6223 = vst [vmem:[#allocation80_spill] sm:$0xff] %v4806_v2  ;;  %v4811_v50 = vsel %vm620_vm0, %v2223_v41, %v6224_v45  ;;  %v932_v20 = vpop.permute.xlu1 %931  ;;  %v4815_v25 = vadd.f32 %v4305_v58, %v989_v6  ;;  %v6231_v41 = vrot.slane %v4520_v46, 1  ;;  %v6235_v45 = vld [vmem:[#allocation38_spill] sm:$0xff] }
 0x193   : > { %6225 = vst [vmem:[#allocation81_spill] sm:$0xff] %v4811_v50  ;;  %v926_v40 = vpop.permute.xlu0 %925  ;;  %v4823_v44 = vsel %vm539_vm1, %v6229_v59, %v1358_v56  ;;  %v6239_v59 = vld [vmem:[#allocation10_spill] sm:$0xff] }
 0x194   : > { %6227 = vst [vmem:[#allocation7_spill] sm:$0xff] %v4815_v25  ;;  %v1005_v23 = vadd.f32 %v926_v40, %v861_v34  ;;  %2473 = vrot.lane.b32.xlu1 %v2263_v12, %s3608_s18  ;;  %6230 = vst [vmem:[#allocation37_spill] sm:$0xff] %v4823_v44  ;;  %v4828_v18 = vsel %vm620_vm0, %v1437_v11, %v6231_v41  ;;  %v4833_v34 = vpop.f32.mrb[34].mxu0  ;;  %v6245_v25 = vld [vmem:[#allocation40_spill] sm:$0xff] }
 0x195   : > { %1682 = vrot.lane.b32.xlu0 %v6228_v37, %s3608_s18  ;;  %6232 = vst [vmem:[#allocation82_spill] sm:$0xff] %v4828_v18  ;;  %6234 = vst [vmem:[#allocation84_spill] sm:$0xff] %v4833_v34  ;;  %v6236_v37 = vld [vmem:[#allocation35_spill] sm:$0xff]  ;;  %v4840_v40 = vpop.f32.mrb[35].mxu0  ;;  %v2147_v11 = vrot.slane %v4833_v34, 7 }
 0x196   : > { %v4831_v58 = vadd.f32 %v4513_v48, %v1005_v23  ;;  %v754_v6 = vpop.permute.xlu1 %753  ;;  %v6237_v22 = vrot.slane %v6236_v37, 7  ;;  %6238 = vst [vmem:[#allocation38_spill] sm:$0xff] %v4840_v40  ;;  %v2226_v43 = vrot.slane %v4840_v40, 1  ;;  %v6242_v37 = vld [vmem:[#allocation36_spill] sm:$0xff]  ;;  %v6244_v23 = vrot.slane %v4339_v19, 7 }
 0x197   : > { %v786_v12 = vpop.permute.xlu0 %785  ;;  %v847_v41 = vadd.f32 %v754_v6, %v6239_v59  ;;  %v1361_v59 = vrot.slane %v4547_v13, 7 }
 0x198   : > { %6233 = vst [vmem:[#allocation83_spill] sm:$0xff] %v4831_v58  ;;  %1540 = vrot.lane.b32.xlu1 %v6235_v45, %s3609_s16  ;;  %v2183_v56 = vsel %vm539_vm1, 0.0, %v6237_v22  ;;  %v6240_v45 = vld [vmem:[#allocation8_spill] sm:$0xff]  ;;  %v6241_v22 = vld [vmem:[#allocation39_spill] sm:$0xff]  ;;  %v1395_v6 = vsel %vm539_vm1, 0.0, %v6244_v23  ;;  %v1440_v23 = vrot.slane %v4549_v49, 1 }
 0x199   : > { %2327 = vrot.lane.b32.xlu0 %v2183_v56, %s3609_s16  ;;  %v6243_v56 = vrot.slane %v6242_v37, 1 }
 0x19a   : > { %v756_v58 = vpop.permute.xlu1 %755 }
 0x19b   : > { %v848_v18 = vadd.f32 %v6240_v45, %v756_v58  ;;  %v898_v44 = vpop.permute.xlu0 %897  ;;  %v1475_v48 = vsel %vm620_vm0, %v6243_v56, 0.0 }
 0x19c   : > { %v991_v2 = vadd.f32 %v898_v44, %v847_v41  ;;  %2329 = vrot.lane.b32.xlu1 %v6241_v22, %s3609_s16  ;;  %v6246_v41 = vrot.slane %v4840_v40, 7  ;;  %v6247_v22 = vld [vmem:[#allocation11_spill] sm:$0xff] }
 0x19d   : > { %v992_v50 = vadd.f32 %v900_v38, %v848_v18  ;;  %2471 = vrot.lane.b32.xlu0 %v6245_v25, %s3608_s18  ;;  %v863_v56 = vadd.f32 %v786_v12, %v6247_v22  ;;  %v6248_v38 = vrot.slane %v4833_v34, 1  ;;  %v6250_v18 = vld [vmem:[#allocation9_spill] sm:$0xff]  ;;  %v6253_v22 = vrot.slane %v4547_v13, 1 }
 0x19e   : > { %v4865_v45 = vsel %vm539_vm1, %v6246_v41, %v2147_v11  ;;  %v788_v35 = vpop.permute.xlu1 %787  ;;  %v4870_v51 = vadd.f32 %v4339_v19, %v991_v2  ;;  %v6251_v19 = vrot.slane %v4335_v33, 1  ;;  %v6252_v41 = vrot.slane %v4549_v49, 7 }
 0x19f   : > { %v4875_v25 = vsel %vm620_vm0, %v2226_v43, %v6248_v38  ;;  %v864_v58 = vadd.f32 %v6250_v18, %v788_v35  ;;  %v930_v44 = vpop.permute.xlu0 %929  ;;  %v4879_v40 = vadd.f32 %v6242_v37, %v992_v50  ;;  %v4894_v50 = vsel %vm620_vm0, %v1440_v23, %v6253_v22  ;;  %v4899_v37 = vpop.f32.mrb[36].mxu0 }
 0x1a0   : > { %6249 = vst [vmem:[#allocation10_spill] sm:$0xff] %v4875_v25  ;;  %v1007_v11 = vadd.f32 %v930_v44, %v863_v56  ;;  %1688 = vrot.lane.b32.xlu1 %v1475_v48, %s3608_s18  ;;  %v2264_v2 = vsel %vm620_vm0, %v6251_v19, 0.0  ;;  %v4889_v43 = vsel %vm539_vm1, %v6252_v41, %v1361_v59  ;;  %6254 = vst [vmem:[#allocation8_spill] sm:$0xff] %v4894_v50  ;;  %v2150_v59 = vrot.slane %v4899_v37, 7  ;;  %v6259_v44 = vld [vmem:[#allocation42_spill] sm:$0xff]  ;;  %v6261_v19 = vld [vmem:[#allocation41_spill] sm:$0xff] }
 0x1a1   : > { %v1008_v12 = vadd.f32 %v932_v20, %v864_v58  ;;  %1542 = vrot.lane.b32.xlu0 %v1395_v6, %s3609_s16  ;;  %6256 = vst [vmem:[#allocation36_spill] sm:$0xff] %v4899_v37  ;;  %v4906_v58 = vpop.f32.mrb[37].mxu0  ;;  %v6268_v50 = vld [vmem:[#allocation45_spill] sm:$0xff] }
 0x1a2   : > { %v904_v35 = vpop.permute.xlu1 %903  ;;  %v4897_v48 = vadd.f32 %v4537_v5, %v1007_v11  ;;  %6258 = vst [vmem:[#allocation11_spill] sm:$0xff] %v4906_v58  ;;  %v6059_v23 = vrot.slane %v4906_v58, 7  ;;  %v2229_v38 = vrot.slane %v4906_v58, 1  ;;  %v1443_v58 = vrot.slane %v4567_v55, 1 }
 0x1a3   : > { %v758_v20 = vpop.permute.xlu0 %757  ;;  %v4902_v6 = vadd.f32 %v4520_v46, %v1008_v12  ;;  %v6260_v12 = vld [vmem:[#allocation43_spill] sm:$0xff] }
 0x1a4   : > { %6255 = vst [vmem:[#allocation39_spill] sm:$0xff] %v4897_v48  ;;  %2477 = vrot.lane.b32.xlu1 %v2264_v2, %s3608_s18  ;;  %v6262_v2 = vrot.slane %v6261_v19, 7  ;;  %v4921_v22 = vsel %vm539_vm1, %v6059_v23, %v2150_v59  ;;  %v6267_v59 = vld [vmem:[#allocation12_spill] sm:$0xff] }
 0x1a5   : > { %6257 = vst [vmem:[#allocation40_spill] sm:$0xff] %v4902_v6  ;;  %1686 = vrot.lane.b32.xlu0 %v6259_v44, %s3608_s18  ;;  %6263 = vst [vmem:[#allocation9_spill] sm:$0xff] %v4921_v22  ;;  %v1364_v44 = vrot.slane %v4565_v42, 7  ;;  %v6264_v6 = vrot.slane %v4899_v37, 1  ;;  %v6269_v37 = vld [vmem:[#allocation47_spill] sm:$0xff] }
 0x1a6   : > { %v936_v18 = vpop.permute.xlu1 %935  ;;  %v2184_v41 = vsel %vm539_vm1, 0.0, %v6262_v2  ;;  %v6273_v2 = vld [vmem:[#allocation15_spill] sm:$0xff] }
 0x1a7   : > { %v790_v11 = vpop.permute.xlu0 %789  ;;  %v4929_v48 = vsel %vm620_vm0, %v2229_v38, %v6264_v6  ;;  %v6270_v6 = vrot.slane %v4361_v24, 1  ;;  %v6271_v38 = vrot.slane %v4567_v55, 7 }
 0x1a8   : > { %1544 = vrot.lane.b32.xlu1 %v6260_v12, %s3609_s16  ;;  %6265 = vst [vmem:[#allocation42_spill] sm:$0xff] %v4929_v48  ;;  %v6266_v12 = vld [vmem:[#allocation14_spill] sm:$0xff] }
 0x1a9   : > { %2331 = vrot.lane.b32.xlu0 %v2184_v41, %s3609_s16  ;;  %v849_v25 = vadd.f32 %v758_v20, %v6266_v12  ;;  %v1476_v20 = vsel %vm620_vm0, %v6270_v6, 0.0  ;;  %v4945_v12 = vsel %vm539_vm1, %v6271_v38, %v1364_v44  ;;  %v4968_v38 = vpop.f32.mrb[38].mxu0 }
 0x1aa   : > { %v760_v34 = vpop.permute.xlu1 %759  ;;  %6272 = vst [vmem:[#allocation43_spill] sm:$0xff] %v4945_v12  ;;  %6279 = vst [vmem:[#allocation14_spill] sm:$0xff] %v4968_v38 }
 0x1ab   : > { %v850_v23 = vadd.f32 %v6267_v59, %v760_v34  ;;  %v902_v22 = vpop.permute.xlu0 %901  ;;  %v865_v34 = vadd.f32 %v790_v11, %v6273_v2 }
 0x1ac   : > { %v993_v41 = vadd.f32 %v902_v22, %v849_v25  ;;  %2333 = vrot.lane.b32.xlu1 %v6268_v50, %s3609_s16  ;;  %v6274_v25 = vrot.slane %v4377_v62, 7  ;;  %v6277_v22 = vld [vmem:[#allocation13_spill] sm:$0xff] }
 0x1ad   : > { %v994_v56 = vadd.f32 %v904_v35, %v850_v23  ;;  %2475 = vrot.lane.b32.xlu0 %v6269_v37, %s3608_s18  ;;  %v6275_v37 = vrot.slane %v4565_v42, 1 }
 0x1ae   : > { %v792_v59 = vpop.permute.xlu1 %791  ;;  %v1396_v50 = vsel %vm539_vm1, 0.0, %v6274_v25  ;;  %v4952_v35 = vadd.f32 %v4377_v62, %v993_v41  ;;  %v6278_v62 = vrot.slane %v4373_v9, 1  ;;  %v4970_v25 = vpop.f32.mrb[39].mxu0 }
 0x1af   : > { %v4957_v23 = vsel %vm620_vm0, %v1443_v58, %v6275_v37  ;;  %v866_v6 = vadd.f32 %v6277_v22, %v792_v59  ;;  %v934_v48 = vpop.permute.xlu0 %933  ;;  %v4961_v44 = vadd.f32 %v4361_v24, %v994_v56  ;;  %6280 = vst [vmem:[#allocation12_spill] sm:$0xff] %v4970_v25  ;;  %v6063_v56 = vrot.slane %v4968_v38, 1 }
 0x1b0   : > { %6276 = vst [vmem:[#allocation41_spill] sm:$0xff] %v4957_v23  ;;  %v1009_v11 = vadd.f32 %v934_v48, %v865_v34  ;;  %1692 = vrot.lane.b32.xlu1 %v1476_v20, %s3608_s18  ;;  %v2265_v41 = vsel %vm620_vm0, %v6278_v62, 0.0  ;;  %v2153_v48 = vrot.slane %v4968_v38, 7  ;;  %v2232_v20 = vrot.slane %v4970_v25, 1  ;;  %v6294_v23 = vld [vmem:[#allocation50_spill] sm:$0xff] }
 0x1b1   : > { %v1010_v2 = vadd.f32 %v936_v18, %v866_v6  ;;  %1546 = vrot.lane.b32.xlu0 %v1396_v50, %s3609_s16  ;;  %v6062_v18 = vrot.slane %v4970_v25, 7  ;;  %v1367_v34 = vrot.slane %v4580_v29, 7  ;;  %v1446_v6 = vrot.slane %v4585_v14, 1 }
 0x1b2   : > { %v908_v58 = vpop.permute.xlu1 %907  ;;  %v4973_v59 = vadd.f32 %v4549_v49, %v1009_v11  ;;  %v4997_v62 = vsel %vm620_vm0, %v2232_v20, %v6063_v56  ;;  %v6291_v56 = vld [vmem:[#allocation18_spill] sm:$0xff] }
 0x1b3   : > { %v762_v24 = vpop.permute.xlu0 %761  ;;  %v4983_v37 = vadd.f32 %v4547_v13, %v1010_v2  ;;  %v4992_v11 = vsel %vm539_vm1, %v6062_v18, %v2153_v48  ;;  %6284 = vst [vmem:[#allocation13_spill] sm:$0xff] %v4997_v62  ;;  %v6289_v18 = vrot.slane %v4580_v29, 1 }
 0x1b4   : > { %6281 = vst [vmem:[#allocation45_spill] sm:$0xff] %v4973_v59  ;;  %2481 = vrot.lane.b32.xlu1 %v2265_v41, %s3608_s18  ;;  %6283 = vst [vmem:[#allocation15_spill] sm:$0xff] %v4992_v11  ;;  %v851_v59 = vadd.f32 %v762_v24, %v6291_v56  ;;  %v5027_v56 = vpop.f32.mrb[40].mxu0 }
 0x1b5   : > { %6282 = vst [vmem:[#allocation47_spill] sm:$0xff] %v4983_v37  ;;  %1690 = vrot.lane.b32.xlu0 %v4406_v16, %s3608_s18  ;;  %v6285_v16 = vld [vmem:[#allocation46_spill] sm:$0xff]  ;;  %v6287_v37 = vrot.slane %v4585_v14, 7  ;;  %v5013_v20 = vsel %vm620_vm0, %v1446_v6, %v6289_v18  ;;  %v6297_v18 = vrot.slane %v4413_v1, 7  ;;  %6298 = vst [vmem:[#allocation18_spill] sm:$0xff] %v5027_v56 }
 0x1b6   : > { %v940_v41 = vpop.permute.xlu1 %939  ;;  %v6286_v50 = vrot.slane %v6285_v16, 7  ;;  %6290 = vst [vmem:[#allocation85_spill] sm:$0xff] %v5013_v20 }
 0x1b7   : > { %v794_v2 = vpop.permute.xlu0 %793  ;;  %v5008_v48 = vsel %vm539_vm1, %v6287_v37, %v1367_v34  ;;  %v6295_v34 = vld [vmem:[#allocation48_spill] sm:$0xff]  ;;  %v1397_v24 = vsel %vm539_vm1, 0.0, %v6297_v18 }
 0x1b8   : > { %1548 = vrot.lane.b32.xlu1 %v4411_v27, %s3609_s16  ;;  %v2185_v22 = vsel %vm539_vm1, 0.0, %v6286_v50  ;;  %6288 = vst [vmem:[#allocation46_spill] sm:$0xff] %v5008_v48  ;;  %v6292_v27 = vld [vmem:[#allocation16_spill] sm:$0xff]  ;;  %v6293_v50 = vld [vmem:[#allocation49_spill] sm:$0xff]  ;;  %v6296_v37 = vrot.slane %v6295_v34, 1  ;;  %v867_v6 = vadd.f32 %v794_v2, %v4095_v39 }
 0x1b9   : > { %2335 = vrot.lane.b32.xlu0 %v2185_v22, %s3609_s16 }
 0x1ba   : > { %v764_v62 = vpop.permute.xlu1 %763  ;;  %v1477_v48 = vsel %vm620_vm0, %v6296_v37, 0.0 }
 0x1bb   : > { %v852_v38 = vadd.f32 %v6292_v27, %v764_v62  ;;  %v906_v11 = vpop.permute.xlu0 %905  ;;  %v6301_v62 = vld [vmem:[#allocation17_spill] sm:$0xff] }
 0x1bc   : > { %v995_v25 = vadd.f32 %v906_v11, %v851_v59  ;;  %2337 = vrot.lane.b32.xlu1 %v6293_v50, %s3609_s16 }
 0x1bd   : > { %v996_v22 = vadd.f32 %v908_v58, %v852_v38  ;;  %2479 = vrot.lane.b32.xlu0 %v6294_v23, %s3608_s18  ;;  %v2156_v38 = vrot.slane %v5027_v56, 7  ;;  %v5035_v58 = vpop.f32.mrb[41].mxu0  ;;  %v1370_v23 = vrot.slane %v4592_v4, 7 }
 0x1be   : > { %v796_v59 = vpop.permute.xlu1 %795  ;;  %v5031_v11 = vadd.f32 %v4413_v1, %v995_v25  ;;  %6300 = vst [vmem:[#allocation49_spill] sm:$0xff] %v5035_v58  ;;  %v6068_v18 = vrot.slane %v5035_v58, 7  ;;  %v2235_v39 = vrot.slane %v5035_v58, 1  ;;  %v6303_v1 = vld [vmem:[#allocation52_spill] sm:$0xff]  ;;  %v6321_v58 = vld [vmem:[#allocation51_spill] sm:$0xff] }
 0x1bf   : > { %v868_v27 = vadd.f32 %v6301_v62, %v796_v59  ;;  %v938_v50 = vpop.permute.xlu0 %937  ;;  %v5039_v37 = vadd.f32 %v6295_v34, %v996_v22  ;;  %v6304_v25 = vrot.slane %v6303_v1, 1  ;;  %v6069_v22 = vrot.slane %v4611_v47, 7 }
 0x1c0   : > { %6299 = vst [vmem:[#allocation16_spill] sm:$0xff] %v5031_v11  ;;  %v1011_v2 = vadd.f32 %v938_v50, %v867_v6  ;;  %1696 = vrot.lane.b32.xlu1 %v1477_v48, %s3608_s18  ;;  %v6070_v11 = vrot.slane %v4592_v4, 1  ;;  %v1449_v34 = vrot.slane %v4611_v47, 1  ;;  %v5055_v6 = vsel %vm539_vm1, %v6068_v18, %v2156_v38  ;;  %v6314_v18 = vld [vmem:[#allocation54_spill] sm:$0xff] }
 0x1c1   : > { %6302 = vst [vmem:[#allocation50_spill] sm:$0xff] %v5039_v37  ;;  %v2266_v20 = vsel %vm620_vm0, %v6304_v25, 0.0  ;;  %v1012_v59 = vadd.f32 %v940_v41, %v868_v27  ;;  %1550 = vrot.lane.b32.xlu0 %v1397_v24, %s3609_s16  ;;  %6305 = vst [vmem:[#allocation48_spill] sm:$0xff] %v5055_v6  ;;  %v6306_v62 = vrot.slane %v5027_v56, 1  ;;  %v6310_v27 = vld [vmem:[#allocation53_spill] sm:$0xff]  ;;  %v5074_v38 = vsel %vm539_vm1, %v6069_v22, %v1370_v23 }
 0x1c2   : > { %v912_v48 = vpop.permute.xlu1 %911  ;;  %v5063_v25 = vadd.f32 %v4567_v55, %v1011_v2  ;;  %6311 = vst [vmem:[#allocation53_spill] sm:$0xff] %v5074_v38  ;;  %v6318_v22 = vld [vmem:[#allocation21_spill] sm:$0xff] }
 0x1c3   : > { %v5060_v50 = vsel %vm620_vm0, %v2235_v39, %v6306_v62  ;;  %v766_v41 = vpop.permute.xlu0 %765  ;;  %v5066_v24 = vadd.f32 %v4565_v42, %v1012_v59  ;;  %v5079_v39 = vsel %vm620_vm0, %v1449_v34, %v6070_v11  ;;  %v5081_v62 = vpop.f32.mrb[42].mxu0  ;;  %v6323_v34 = vrot.slane %v4441_v15, 7 }
 0x1c4   : > { %6307 = vst [vmem:[#allocation17_spill] sm:$0xff] %v5060_v50  ;;  %6308 = vst [vmem:[#allocation86_spill] sm:$0xff] %v5063_v25  ;;  %2485 = vrot.lane.b32.xlu1 %v2266_v20, %s3608_s18  ;;  %v6315_v20 = vld [vmem:[#allocation55_spill] sm:$0xff]  ;;  %v5088_v25 = vpop.f32.mrb[43].mxu0  ;;  %v2159_v23 = vrot.slane %v5081_v62, 7  ;;  %v853_v11 = vadd.f32 %v766_v41, %v6318_v22  ;;  %v1373_v41 = vrot.slane %v4652_v60, 7 }
 0x1c5   : > { %6309 = vst [vmem:[#allocation87_spill] sm:$0xff] %v5066_v24  ;;  %1694 = vrot.lane.b32.xlu0 %v6310_v27, %s3608_s18  ;;  %6312 = vst [vmem:[#allocation88_spill] sm:$0xff] %v5079_v39  ;;  %v6316_v24 = vrot.slane %v6315_v20, 7  ;;  %v2238_v39 = vrot.slane %v5088_v25, 1  ;;  %v1398_v22 = vsel %vm539_vm1, 0.0, %v6323_v34  ;;  %v6324_v20 = vld [vmem:[#allocation58_spill] sm:$0xff] }
 0x1c6   : > { %v944_v2 = vpop.permute.xlu1 %943  ;;  %6313 = vst [vmem:[#allocation89_spill] sm:$0xff] %v5081_v62  ;;  %6317 = vst [vmem:[#allocation54_spill] sm:$0xff] %v5088_v25  ;;  %v1452_v34 = vrot.slane %v4667_v3, 1 }
 0x1c7   : > { %v798_v59 = vpop.permute.xlu0 %797  ;;  %v2186_v27 = vsel %vm539_vm1, 0.0, %v6316_v24  ;;  %v6320_v24 = vld [vmem:[#allocation57_spill] sm:$0xff] }
 0x1c8   : > { %1552 = vrot.lane.b32.xlu1 %v6314_v18, %s3609_s16  ;;  %v6319_v18 = vld [vmem:[#allocation19_spill] sm:$0xff] }
 0x1c9   : > { %2339 = vrot.lane.b32.xlu0 %v2186_v27, %s3609_s16  ;;  %v6322_v27 = vrot.slane %v6321_v58, 1 }
 0x1ca   : > { %v768_v50 = vpop.permute.xlu1 %767 }
 0x1cb   : > { %v854_v38 = vadd.f32 %v6319_v18, %v768_v50  ;;  %v910_v6 = vpop.permute.xlu0 %909  ;;  %v1478_v37 = vsel %vm620_vm0, %v6322_v27, 0.0 }
 0x1cc   : > { %v997_v1 = vadd.f32 %v910_v6, %v853_v11  ;;  %2341 = vrot.lane.b32.xlu1 %v6320_v24, %s3609_s16  ;;  %v6325_v6 = vrot.slane %v5088_v25, 7  ;;  %v6326_v24 = vld [vmem:[#allocation22_spill] sm:$0xff] }
 0x1cd   : > { %v998_v56 = vadd.f32 %v912_v48, %v854_v38  ;;  %2483 = vrot.lane.b32.xlu0 %v6324_v20, %s3608_s18  ;;  %v869_v27 = vadd.f32 %v798_v59, %v6326_v24  ;;  %v6327_v48 = vrot.slane %v5081_v62, 1  ;;  %v6329_v20 = vld [vmem:[#allocation20_spill] sm:$0xff]  ;;  %v6332_v24 = vrot.slane %v4667_v3, 7 }
 0x1ce   : > { %v5113_v18 = vsel %vm539_vm1, %v6325_v6, %v2159_v23  ;;  %v800_v12 = vpop.permute.xlu1 %799  ;;  %v5118_v9 = vadd.f32 %v4441_v15, %v997_v1  ;;  %v6330_v6 = vld [vmem:[#allocation63_spill] sm:$0xff] }
 0x1cf   : > { %v5123_v38 = vsel %vm620_vm0, %v2238_v39, %v6327_v48  ;;  %v870_v50 = vadd.f32 %v6329_v20, %v800_v12  ;;  %v942_v11 = vpop.permute.xlu0 %941  ;;  %v5127_v25 = vadd.f32 %v6321_v58, %v998_v56  ;;  %v6331_v15 = vrot.slane %v6330_v6, 1 }
 0x1d0   : > { %6328 = vst [vmem:[#allocation21_spill] sm:$0xff] %v5123_v38  ;;  %v1013_v23 = vadd.f32 %v942_v11, %v869_v27  ;;  %1700 = vrot.lane.b32.xlu1 %v1478_v37, %s3608_s18  ;;  %v5137_v39 = vsel %vm539_vm1, %v6332_v24, %v1373_v41  ;;  %v6334_v48 = vrot.slane %v4652_v60, 1  ;;  %v6340_v11 = vld [vmem:[#allocation64_spill] sm:$0xff]  ;;  %v6342_v24 = vld [vmem:[#allocation66_spill] sm:$0xff] }
 0x1d1   : > { %v1014_v59 = vadd.f32 %v944_v2, %v870_v50  ;;  %1554 = vrot.lane.b32.xlu0 %v1398_v22, %s3609_s16  ;;  %v2267_v1 = vsel %vm620_vm0, %v6331_v15, 0.0  ;;  %6333 = vst [vmem:[#allocation19_spill] sm:$0xff] %v5137_v39  ;;  %v5147_v2 = vpop.f32.mrb[44].mxu0  ;;  %v6348_v39 = vld [vmem:[#allocation67_spill] sm:$0xff] }
 0x1d2   : > { %v916_v12 = vpop.permute.xlu1 %915  ;;  %v5142_v56 = vsel %vm620_vm0, %v1452_v34, %v6334_v48  ;;  %v5145_v58 = vadd.f32 %v4585_v14, %v1013_v23  ;;  %6337 = vst [vmem:[#allocation58_spill] sm:$0xff] %v5147_v2  ;;  %v2162_v41 = vrot.slane %v5147_v2, 7  ;;  %v5154_v50 = vpop.f32.mrb[45].mxu0 }
 0x1d3   : > { %6335 = vst [vmem:[#allocation57_spill] sm:$0xff] %v5142_v56  ;;  %v770_v37 = vpop.permute.xlu0 %769  ;;  %v5150_v22 = vadd.f32 %v4580_v29, %v1014_v59  ;;  %6339 = vst [vmem:[#allocation20_spill] sm:$0xff] %v5154_v50  ;;  %v6082_v34 = vrot.slane %v5154_v50, 7  ;;  %v2241_v20 = vrot.slane %v5154_v50, 1  ;;  %v6341_v59 = vld [vmem:[#allocation65_spill] sm:$0xff]  ;;  %v1455_v50 = vrot.slane %v4735_v0, 1 }
 0x1d4   : > { %6336 = vst [vmem:[#allocation51_spill] sm:$0xff] %v5145_v58  ;;  %2489 = vrot.lane.b32.xlu1 %v2267_v1, %s3608_s18  ;;  %v6343_v1 = vrot.slane %v6342_v24, 7  ;;  %v6345_v58 = vrot.slane %v5147_v2, 1  ;;  %v6349_v2 = vld [vmem:[#allocation68_spill] sm:$0xff] }
 0x1d5   : > { %6338 = vst [vmem:[#allocation22_spill] sm:$0xff] %v5150_v22  ;;  %1698 = vrot.lane.b32.xlu0 %v6340_v11, %s3608_s18  ;;  %v5169_v22 = vsel %vm539_vm1, %v6082_v34, %v2162_v41  ;;  %v1376_v11 = vrot.slane %v4724_v26, 7  ;;  %v6347_v41 = vld [vmem:[#allocation23_spill] sm:$0xff] }
 0x1d6   : > { %v948_v23 = vpop.permute.xlu1 %947  ;;  %v2187_v48 = vsel %vm539_vm1, 0.0, %v6343_v1  ;;  %6344 = vst [vmem:[#allocation63_spill] sm:$0xff] %v5169_v22  ;;  %v5177_v38 = vsel %vm620_vm0, %v2241_v20, %v6345_v58  ;;  %v6086_v1 = vrot.slane %v4724_v26, 1  ;;  %v6350_v58 = vrot.slane %v4448_v10, 1 }
 0x1d7   : > { %v802_v15 = vpop.permute.xlu0 %801  ;;  %v6351_v20 = vrot.slane %v4735_v0, 7 }
 0x1d8   : > { %1556 = vrot.lane.b32.xlu1 %v6341_v59, %s3609_s16  ;;  %v6346_v59 = vld [vmem:[#allocation25_spill] sm:$0xff] }
 0x1d9   : > { %2343 = vrot.lane.b32.xlu0 %v2187_v48, %s3609_s16  ;;  %v855_v62 = vadd.f32 %v770_v37, %v6346_v59  ;;  %v1479_v37 = vsel %vm620_vm0, %v6350_v58, 0.0  ;;  %v5193_v59 = vsel %vm539_vm1, %v6351_v20, %v1376_v11  ;;  %v5216_v20 = vpop.f32.mrb[46].mxu0 }
 0x1da   : > { %v772_v56 = vpop.permute.xlu1 %771 }
 0x1db   : > { %v856_v34 = vadd.f32 %v6347_v41, %v772_v56  ;;  %v914_v22 = vpop.permute.xlu0 %913  ;;  %v871_v56 = vadd.f32 %v802_v15, %v4170_v32 }
 0x1dc   : > { %v999_v48 = vadd.f32 %v914_v22, %v855_v62  ;;  %2345 = vrot.lane.b32.xlu1 %v6348_v39, %s3609_s16  ;;  %v6352_v62 = vrot.slane %v4465_v30, 7  ;;  %v6353_v22 = vld [vmem:[#allocation24_spill] sm:$0xff] }
 0x1dd   : > { %v1000_v27 = vadd.f32 %v916_v12, %v856_v34  ;;  %2487 = vrot.lane.b32.xlu0 %v6349_v2, %s3608_s18  ;;  %v5205_v2 = vsel %vm620_vm0, %v1455_v50, %v6086_v1 }
 0x1de   : > { %v804_v41 = vpop.permute.xlu1 %803  ;;  %v1399_v39 = vsel %vm539_vm1, 0.0, %v6352_v62  ;;  %v5200_v12 = vadd.f32 %v4465_v30, %v999_v48  ;;  %v6354_v30 = vrot.slane %v4594_v7, 1  ;;  %v5218_v62 = vpop.f32.mrb[47].mxu0 }
 0x1df   : > { %v872_v34 = vadd.f32 %v6353_v22, %v804_v41  ;;  %v946_v58 = vpop.permute.xlu0 %945  ;;  %v5209_v11 = vadd.f32 %v4448_v10, %v1000_v27  ;;  %v2165_v27 = vrot.slane %v5216_v20, 7 }
 0x1e0   : > { %v1015_v32 = vadd.f32 %v946_v58, %v871_v56  ;;  %1704 = vrot.lane.b32.xlu1 %v1479_v37, %s3608_s18  ;;  %v2268_v48 = vsel %vm620_vm0, %v6354_v30, 0.0  ;;  %v6087_v37 = vrot.slane %v5216_v20, 1  ;;  %v2244_v56 = vrot.slane %v5218_v62, 1 }
 0x1e1   : > { %v1016_v15 = vadd.f32 %v948_v23, %v872_v34  ;;  %1558 = vrot.lane.b32.xlu0 %v1399_v39, %s3609_s16  ;;  %v6085_v23 = vrot.slane %v5218_v62, 7 }
 0x1e2   : > { %v920_v50 = vpop.permute.xlu1 %919  ;;  %v5221_v41 = vadd.f32 %v4611_v47, %v1015_v32  ;;  %v5241_v34 = vsel %vm620_vm0, %v2244_v56, %v6087_v37  ;;  %v6359_v37 = vld [vmem:[#allocation69_spill] sm:$0xff] }
 0x1e3   : > { %v774_v10 = vpop.permute.xlu0 %773  ;;  %v5229_v39 = vadd.f32 %v4592_v4, %v1016_v15  ;;  %v5236_v22 = vsel %vm539_vm1, %v6085_v23, %v2165_v27  ;;  %6357 = vst [vmem:[#allocation66_spill] sm:$0xff] %v5241_v34  ;;  %v6358_v15 = vrot.slane %v4613_v54, 7 }
 0x1e4   : > { %6355 = vst [vmem:[#allocation64_spill] sm:$0xff] %v5221_v41  ;;  %2493 = vrot.lane.b32.xlu1 %v2268_v48, %s3608_s18 }
 0x1e5   : > { %6356 = vst [vmem:[#allocation65_spill] sm:$0xff] %v5229_v39  ;;  %1702 = vrot.lane.b32.xlu0 %v4599_v31, %s3608_s18  ;;  %v2188_v30 = vsel %vm539_vm1, 0.0, %v6358_v15  ;;  %v857_v31 = vadd.f32 %v774_v10, %v4209_v52  ;;  %v6361_v52 = vld [vmem:[#allocation56_spill] sm:$0xff] }
 0x1e6   : > { %v952_v58 = vpop.permute.xlu1 %951  ;;  %v6362_v10 = vrot.slane %v6361_v52, 7 }
 0x1e7   : > { %v806_v32 = vpop.permute.xlu0 %805 }
 0x1e8   : > { %1560 = vrot.lane.b32.xlu1 %v4604_v53, %s3609_s16  ;;  %v6360_v53 = vrot.slane %v4475_v17, 1 }
 0x1e9   : > { %2347 = vrot.lane.b32.xlu0 %v2188_v30, %s3609_s16  ;;  %v873_v30 = vadd.f32 %v806_v32, %v4211_v36 }
 0x1ea   : > { %v776_v48 = vpop.permute.xlu1 %775  ;;  %v1480_v15 = vsel %vm620_vm0, %v6360_v53, 0.0 }
 0x1eb   : > { %v858_v27 = vadd.f32 %v4202_v63, %v776_v48  ;;  %v918_v23 = vpop.permute.xlu0 %917  ;;  %v1400_v63 = vsel %vm539_vm1, 0.0, %v6362_v10 }
 0x1ec   : > { %v1001_v1 = vadd.f32 %v918_v23, %v857_v31  ;;  %2349 = vrot.lane.b32.xlu1 %v4622_v8, %s3609_s16  ;;  %v6363_v31 = vld [vmem:[#allocation26_spill] sm:$0xff] }
 0x1ed   : > { %v1002_v56 = vadd.f32 %v920_v50, %v858_v27  ;;  %2491 = vrot.lane.b32.xlu0 %v6359_v37, %s3608_s18 }
 0x1ee   : > { %v808_v39 = vpop.permute.xlu1 %807  ;;  %v5263_v23 = vadd.f32 %v6361_v52, %v1001_v1 }
 0x1ef   : > { %v874_v8 = vadd.f32 %v6363_v31, %v808_v39  ;;  %v950_v50 = vpop.permute.xlu0 %949  ;;  %v5267_v48 = vadd.f32 %v4475_v17, %v1002_v56  ;;  %v6366_v17 = vld [vmem:[#allocation70_spill] sm:$0xff]  ;;  %v6367_v56 = vrot.slane %v4673_v28, 7 }
 0x1f0   : > { %v1017_v37 = vadd.f32 %v950_v50, %v873_v30  ;;  %1708 = vrot.lane.b32.xlu1 %v1480_v15, %s3608_s18  ;;  %v6368_v30 = vld [vmem:[#allocation59_spill] sm:$0xff] }
 0x1f1   : > { %v1018_v27 = vadd.f32 %v952_v58, %v874_v8  ;;  %1562 = vrot.lane.b32.xlu0 %v1400_v63, %s3609_s16  ;;  %v2189_v58 = vsel %vm539_vm1, 0.0, %v6367_v56  ;;  %v6369_v52 = vrot.slane %v6368_v30, 1  ;;  %v6370_v63 = vld [vmem:[#allocation29_spill] sm:$0xff]  ;;  %v6371_v8 = vld [vmem:[#allocation60_spill] sm:$0xff] }
 0x1f2   : > { %v924_v36 = vpop.permute.xlu1 %923  ;;  %v5272_v32 = vadd.f32 %v4667_v3, %v1017_v37  ;;  %v6372_v50 = vrot.slane %v6371_v8, 7 }
 0x1f3   : > { %v778_v53 = vpop.permute.xlu0 %777  ;;  %v5275_v1 = vadd.f32 %v4652_v60, %v1018_v27  ;;  %v1481_v10 = vsel %vm620_vm0, %v6369_v52, 0.0  ;;  %v6373_v27 = vld [vmem:[#allocation27_spill] sm:$0xff] }
 0x1f4   : > { %6364 = vst [vmem:[#allocation25_spill] sm:$0xff] %v5272_v32  ;;  %1564 = vrot.lane.b32.xlu1 %v4657_v21, %s3609_s16  ;;  %v859_v21 = vadd.f32 %v778_v53, %v6370_v63  ;;  %v1401_v37 = vsel %vm539_vm1, 0.0, %v6372_v50  ;;  %v6375_v53 = vld [vmem:[#allocation28_spill] sm:$0xff] }
 0x1f5   : > { %6365 = vst [vmem:[#allocation23_spill] sm:$0xff] %v5275_v1  ;;  %1706 = vrot.lane.b32.xlu0 %v6366_v17, %s3608_s18 }
 0x1f6   : > { %v956_v39 = vpop.permute.xlu1 %955 }
 0x1f7   : > { %v810_v15 = vpop.permute.xlu0 %809 }
 0x1f8   : > { %2353 = vrot.lane.b32.xlu1 %v4685_v61, %s3609_s16 }
 0x1f9   : > { %2351 = vrot.lane.b32.xlu0 %v2189_v58, %s3609_s16  ;;  %v6374_v58 = vld [vmem:[#allocation30_spill] sm:$0xff] }
 0x1fa   : > { %v780_v31 = vpop.permute.xlu1 %779  ;;  %v875_v32 = vadd.f32 %v810_v15, %v6374_v58  ;;  %v6385_v58 = vld [vmem:[#allocation62_spill] sm:$0xff] }
 0x1fb   : > { %v860_v17 = vadd.f32 %v6373_v27, %v780_v31  ;;  %v922_v56 = vpop.permute.xlu0 %921 }
 0x1fc   : > { %v1003_v1 = vadd.f32 %v922_v56, %v859_v21  ;;  %1712 = vrot.lane.b32.xlu1 %v1481_v10, %s3608_s18  ;;  %v6376_v21 = vld [vmem:[#allocation73_spill] sm:$0xff] }
 0x1fd   : > { %v1004_v61 = vadd.f32 %v924_v36, %v860_v17  ;;  %1566 = vrot.lane.b32.xlu0 %v1401_v37, %s3609_s16  ;;  %v6377_v36 = vld [vmem:[#allocation74_spill] sm:$0xff]  ;;  %v6384_v17 = vld [vmem:[#allocation7_spill] sm:$0xff] }
 0x1fe   : > { %v812_v41 = vpop.permute.xlu1 %811  ;;  %v5299_v52 = vadd.f32 %v6371_v8, %v1003_v1  ;;  %v6379_v1 = vrot.slane %v4731_v57, 7 }
 0x1ff   : > { %v876_v63 = vadd.f32 %v6375_v53, %v812_v41  ;;  %v954_v34 = vpop.permute.xlu0 %953  ;;  %v5303_v50 = vadd.f32 %v6368_v30, %v1004_v61  ;;  %v6386_v53 = vrot.slane %v6385_v58, 7 }
 0x200   : > { %v1019_v31 = vadd.f32 %v954_v34, %v875_v32  ;;  %1568 = vrot.lane.b32.xlu1 %v6376_v21, %s3609_s16  ;;  %v2190_v41 = vsel %vm539_vm1, 0.0, %v6379_v1  ;;  %v6381_v34 = vld [vmem:[#allocation76_spill] sm:$0xff]  ;;  %v6382_v32 = vld [vmem:[#allocation61_spill] sm:$0xff] }
 0x201   : > { %v1020_v10 = vadd.f32 %v956_v39, %v876_v63  ;;  %1710 = vrot.lane.b32.xlu0 %v6377_v36, %s3608_s18  ;;  %v6383_v39 = vrot.slane %v6382_v32, 1  ;;  %v1402_v63 = vsel %vm539_vm1, 0.0, %v6386_v53  ;;  %v6387_v36 = vld [vmem:[#allocation35_spill] sm:$0xff] }
 0x202   : > { %v5310_v15 = vadd.f32 %v4735_v0, %v1019_v31  ;;  %v1685_v37 = vpop.permute.xlu1 %1684 }
 0x203   : > { %v1539_v8 = vpop.permute.xlu0 %1538  ;;  %v5316_v30 = vadd.f32 %v4724_v26, %v1020_v10  ;;  %v1482_v27 = vsel %vm620_vm0, %v6383_v39, 0.0 }
 0x204   : > { %6378 = vst [vmem:[#allocation67_spill] sm:$0xff] %v5310_v15  ;;  %2357 = vrot.lane.b32.xlu1 %v6381_v34, %s3609_s16  ;;  %v1634_v56 = vadd.f32 %v1539_v8, %v6384_v17  ;;  %v6389_v8 = vld [vmem:[#allocation78_spill] sm:$0xff]  ;;  %v6390_v17 = vld [vmem:[#allocation79_spill] sm:$0xff] }
 0x205   : > { %6380 = vst [vmem:[#allocation68_spill] sm:$0xff] %v5316_v30  ;;  %2355 = vrot.lane.b32.xlu0 %v2190_v41, %s3609_s16  ;;  %v6388_v41 = vld [vmem:[#allocation32_spill] sm:$0xff] }
 0x206   : > { %v5325_v61 = vpop.permute.xlu1 %2473 }
 0x207   : > { %v1683_v31 = vpop.permute.xlu0 %1682 }
 0x208   : > { %v1778_v21 = vadd.f32 %v1683_v31, %v1634_v56  ;;  %1716 = vrot.lane.b32.xlu1 %v1482_v27, %s3608_s18  ;;  %v6391_v27 = vld [vmem:[#allocation33_spill] sm:$0xff] }
 0x209   : > { %1570 = vrot.lane.b32.xlu0 %v1402_v63, %s3609_s16  ;;  %v6392_v58 = vrot.slane %v6391_v27, 7  ;;  %v6393_v63 = vld [vmem:[#allocation34_spill] sm:$0xff] }
 0x20a   : > { %v1541_v10 = vpop.permute.xlu1 %1540  ;;  %v5333_v1 = vadd.f32 %v6387_v36, %v1778_v21 }
 0x20b   : > { %v1635_v34 = vadd.f32 %v1541_v10, %v6388_v41  ;;  %v5336_v32 = vpop.permute.xlu0 %2327  ;;  %v2191_v53 = vsel %vm539_vm1, 0.0, %v6392_v58  ;;  %v6394_v10 = vld [vmem:[#allocation80_spill] sm:$0xff] }
 0x20c   : > { %1572 = vrot.lane.b32.xlu1 %v6389_v8, %s3609_s16 }
 0x20d   : > { %v1779_v39 = vadd.f32 %v1685_v37, %v1635_v34  ;;  %1714 = vrot.lane.b32.xlu0 %v6390_v17, %s3608_s18  ;;  %v6395_v37 = vrot.slane %v4520_v46, 1  ;;  %v6396_v34 = vrot.slane %v4537_v5, 7  ;;  %v6397_v46 = vld [vmem:[#allocation37_spill] sm:$0xff] }
 0x20e   : > { %v5342_v56 = vpop.permute.xlu1 %2329 }
 0x20f   : > { %v5348_v31 = vadd.f32 %v6393_v63, %v1779_v39  ;;  %v5350_v21 = vpop.permute.xlu0 %2471  ;;  %v1483_v36 = vsel %vm620_vm0, %v6395_v37, 0.0  ;;  %v1403_v8 = vsel %vm539_vm1, 0.0, %v6396_v34  ;;  %v6399_v34 = vld [vmem:[#allocation38_spill] sm:$0xff] }
 0x210   : > { %2361 = vrot.lane.b32.xlu1 %v6394_v10, %s3609_s16  ;;  %v6398_v10 = vld [vmem:[#allocation82_spill] sm:$0xff] }
 0x211   : > { %2359 = vrot.lane.b32.xlu0 %v2191_v53, %s3609_s16 }
 0x212   : > { %v1689_v41 = vpop.permute.xlu1 %1688 }
 0x213   : > { %v1543_v17 = vpop.permute.xlu0 %1542 }
 0x214   : > { %1720 = vrot.lane.b32.xlu1 %v1483_v36, %s3608_s18  ;;  %v1636_v39 = vadd.f32 %v1543_v17, %v4870_v51  ;;  %v6400_v36 = vrot.slane %v6399_v34, 7 }
 0x215   : > { %1574 = vrot.lane.b32.xlu0 %v1403_v8, %s3609_s16 }
 0x216   : > { %v5364_v58 = vpop.permute.xlu1 %2477  ;;  %v2192_v8 = vsel %vm539_vm1, 0.0, %v6400_v36 }
 0x217   : > { %v1687_v63 = vpop.permute.xlu0 %1686 }
 0x218   : > { %v1780_v53 = vadd.f32 %v1687_v63, %v1636_v39  ;;  %1576 = vrot.lane.b32.xlu1 %v6397_v46, %s3609_s16  ;;  %v6401_v63 = vrot.slane %v4547_v13, 1  ;;  %v6403_v13 = vld [vmem:[#allocation8_spill] sm:$0xff] }
 0x219   : > { %1718 = vrot.lane.b32.xlu0 %v6398_v10, %s3608_s18 }
 0x21a   : > { %v1545_v5 = vpop.permute.xlu1 %1544  ;;  %v5371_v37 = vadd.f32 %v6261_v19, %v1780_v53  ;;  %v1484_v46 = vsel %vm620_vm0, %v6401_v63, 0.0  ;;  %v6402_v53 = vrot.slane %v4549_v49, 7 }
 0x21b   : > { %v1637_v51 = vadd.f32 %v1545_v5, %v4879_v40  ;;  %v5377_v17 = vpop.permute.xlu0 %2331 }
 0x21c   : > { %2365 = vrot.lane.b32.xlu1 %v4865_v45, %s3609_s16  ;;  %v1404_v10 = vsel %vm539_vm1, 0.0, %v6402_v53 }
 0x21d   : > { %v1781_v39 = vadd.f32 %v1689_v41, %v1637_v51  ;;  %2363 = vrot.lane.b32.xlu0 %v2192_v8, %s3609_s16 }
 0x21e   : > { %v5385_v19 = vpop.permute.xlu1 %2333 }
 0x21f   : > { %v5391_v40 = vadd.f32 %v4335_v33, %v1781_v39  ;;  %v5393_v5 = vpop.permute.xlu0 %2475  ;;  %v6404_v33 = vld [vmem:[#allocation11_spill] sm:$0xff] }
 0x220   : > { %1724 = vrot.lane.b32.xlu1 %v1484_v46, %s3608_s18  ;;  %v6405_v8 = vrot.slane %v6404_v33, 7  ;;  %v6406_v46 = vld [vmem:[#allocation9_spill] sm:$0xff] }
 0x221   : > { %1578 = vrot.lane.b32.xlu0 %v1404_v10, %s3609_s16 }
 0x222   : > { %v1693_v45 = vpop.permute.xlu1 %1692  ;;  %v2193_v51 = vsel %vm539_vm1, 0.0, %v6405_v8 }
 0x223   : > { %v1547_v41 = vpop.permute.xlu0 %1546 }
 0x224   : > { %1580 = vrot.lane.b32.xlu1 %v4889_v43, %s3609_s16  ;;  %v1638_v49 = vadd.f32 %v1547_v41, %v4952_v35  ;;  %v6407_v43 = vrot.slane %v4565_v42, 1  ;;  %v6408_v41 = vrot.slane %v4567_v55, 7  ;;  %v6410_v55 = vld [vmem:[#allocation43_spill] sm:$0xff] }
 0x225   : > { %1722 = vrot.lane.b32.xlu0 %v6403_v13, %s3608_s18 }
 0x226   : > { %v5402_v36 = vpop.permute.xlu1 %2481  ;;  %v1485_v53 = vsel %vm620_vm0, %v6407_v43, 0.0  ;;  %v1405_v13 = vsel %vm539_vm1, 0.0, %v6408_v41  ;;  %v6412_v43 = vld [vmem:[#allocation12_spill] sm:$0xff]  ;;  %v6414_v41 = vld [vmem:[#allocation15_spill] sm:$0xff] }
 0x227   : > { %v1691_v39 = vpop.permute.xlu0 %1690 }
 0x228   : > { %v1782_v63 = vadd.f32 %v1691_v39, %v1638_v49  ;;  %2369 = vrot.lane.b32.xlu1 %v6406_v46, %s3609_s16 }
 0x229   : > { %2367 = vrot.lane.b32.xlu0 %v2193_v51, %s3609_s16  ;;  %v6409_v51 = vld [vmem:[#allocation44_spill] sm:$0xff] }
 0x22a   : > { %v1549_v10 = vpop.permute.xlu1 %1548  ;;  %v5414_v35 = vadd.f32 %v6285_v16, %v1782_v63  ;;  %v6411_v63 = vld [vmem:[#allocation41_spill] sm:$0xff] }
 0x22b   : > { %v1639_v8 = vadd.f32 %v1549_v10, %v4961_v44  ;;  %v5420_v49 = vpop.permute.xlu0 %2335  ;;  %v6413_v10 = vrot.slane %v6412_v43, 7 }
 0x22c   : > { %1728 = vrot.lane.b32.xlu1 %v1485_v53, %s3608_s18 }
 0x22d   : > { %v1783_v39 = vadd.f32 %v1693_v45, %v1639_v8  ;;  %1582 = vrot.lane.b32.xlu0 %v1405_v13, %s3609_s16  ;;  %v2194_v45 = vsel %vm539_vm1, 0.0, %v6413_v10  ;;  %v6415_v13 = vrot.slane %v4580_v29, 1  ;;  %v6419_v29 = vld [vmem:[#allocation50_spill] sm:$0xff] }
 0x22e   : > { %v5424_v42 = vpop.permute.xlu1 %2337 }
 0x22f   : > { %v5427_v46 = vadd.f32 %v6409_v51, %v1783_v39  ;;  %v5429_v16 = vpop.permute.xlu0 %2479  ;;  %v1486_v8 = vsel %vm620_vm0, %v6415_v13, 0.0  ;;  %v6416_v39 = vld [vmem:[#allocation16_spill] sm:$0xff] }
 0x230   : > { %1584 = vrot.lane.b32.xlu1 %v6410_v55, %s3609_s16 }
 0x231   : > { %1726 = vrot.lane.b32.xlu0 %v6411_v63, %s3608_s18  ;;  %v6417_v63 = vrot.slane %v4585_v14, 7 }
 0x232   : > { %v1697_v44 = vpop.permute.xlu1 %1696 }
 0x233   : > { %v1551_v53 = vpop.permute.xlu0 %1550  ;;  %v1406_v30 = vsel %vm539_vm1, 0.0, %v6417_v63  ;;  %v6424_v63 = vld [vmem:[#allocation52_spill] sm:$0xff] }
 0x234   : > { %2373 = vrot.lane.b32.xlu1 %v6414_v41, %s3609_s16  ;;  %v1640_v51 = vadd.f32 %v1551_v53, %v6416_v39  ;;  %v6420_v53 = vld [vmem:[#allocation46_spill] sm:$0xff]  ;;  %v6421_v39 = vld [vmem:[#allocation85_spill] sm:$0xff] }
 0x235   : > { %2371 = vrot.lane.b32.xlu0 %v2194_v45, %s3609_s16  ;;  %v6418_v45 = vld [vmem:[#allocation55_spill] sm:$0xff] }
 0x236   : > { %v5445_v55 = vpop.permute.xlu1 %2485 }
 0x237   : > { %v1695_v15 = vpop.permute.xlu0 %1694 }
 0x238   : > { %v1784_v10 = vadd.f32 %v1695_v15, %v1640_v51  ;;  %1732 = vrot.lane.b32.xlu1 %v1486_v8, %s3608_s18  ;;  %v6422_v8 = vld [vmem:[#allocation49_spill] sm:$0xff] }
 0x239   : > { %1586 = vrot.lane.b32.xlu0 %v1406_v30, %s3609_s16  ;;  %v6423_v51 = vrot.slane %v6422_v8, 7  ;;  %v6430_v8 = vld [vmem:[#allocation54_spill] sm:$0xff] }
 0x23a   : > { %v1553_v41 = vpop.permute.xlu1 %1552  ;;  %v5453_v43 = vadd.f32 %v6418_v45, %v1784_v10 }
 0x23b   : > { %v1641_v13 = vadd.f32 %v1553_v41, %v6419_v29  ;;  %v5456_v33 = vpop.permute.xlu0 %2339  ;;  %v2195_v30 = vsel %vm539_vm1, 0.0, %v6423_v51  ;;  %v6425_v41 = vld [vmem:[#allocation48_spill] sm:$0xff] }
 0x23c   : > { %1588 = vrot.lane.b32.xlu1 %v6420_v53, %s3609_s16  ;;  %v6427_v53 = vrot.slane %v4611_v47, 7 }
 0x23d   : > { %v1785_v14 = vadd.f32 %v1697_v44, %v1641_v13  ;;  %1730 = vrot.lane.b32.xlu0 %v6421_v39, %s3608_s18  ;;  %v6426_v44 = vrot.slane %v4592_v4, 1  ;;  %v6428_v4 = vld [vmem:[#allocation53_spill] sm:$0xff] }
 0x23e   : > { %v5462_v15 = vpop.permute.xlu1 %2341  ;;  %v1407_v39 = vsel %vm539_vm1, 0.0, %v6427_v53 }
 0x23f   : > { %v5468_v10 = vadd.f32 %v6424_v63, %v1785_v14  ;;  %v5470_v45 = vpop.permute.xlu0 %2483  ;;  %v1487_v29 = vsel %vm620_vm0, %v6426_v44, 0.0  ;;  %v6429_v44 = vld [vmem:[#allocation88_spill] sm:$0xff] }
 0x240   : > { %2377 = vrot.lane.b32.xlu1 %v6425_v41, %s3609_s16 }
 0x241   : > { %2375 = vrot.lane.b32.xlu0 %v2195_v30, %s3609_s16 }
 0x242   : > { %v1701_v13 = vpop.permute.xlu1 %1700 }
 0x243   : > { %v1555_v51 = vpop.permute.xlu0 %1554 }
 0x244   : > { %1736 = vrot.lane.b32.xlu1 %v1487_v29, %s3608_s18  ;;  %v1642_v14 = vadd.f32 %v1555_v51, %v5118_v9  ;;  %v6431_v29 = vrot.slane %v6430_v8, 7 }
 0x245   : > { %1590 = vrot.lane.b32.xlu0 %v1407_v39, %s3609_s16 }
 0x246   : > { %v5484_v63 = vpop.permute.xlu1 %2489  ;;  %v2196_v39 = vsel %vm539_vm1, 0.0, %v6431_v29  ;;  %v6435_v29 = vld [vmem:[#allocation57_spill] sm:$0xff] }
 0x247   : > { %v1699_v41 = vpop.permute.xlu0 %1698 }
 0x248   : > { %v1786_v30 = vadd.f32 %v1699_v41, %v1642_v14  ;;  %1592 = vrot.lane.b32.xlu1 %v6428_v4, %s3609_s16  ;;  %v6432_v41 = vrot.slane %v4652_v60, 1  ;;  %v6434_v60 = vld [vmem:[#allocation19_spill] sm:$0xff] }
 0x249   : > { %1734 = vrot.lane.b32.xlu0 %v6429_v44, %s3608_s18 }
 0x24a   : > { %v1557_v47 = vpop.permute.xlu1 %1556  ;;  %v5491_v53 = vadd.f32 %v6342_v24, %v1786_v30  ;;  %v1488_v4 = vsel %vm620_vm0, %v6432_v41, 0.0  ;;  %v6433_v30 = vrot.slane %v4667_v3, 7 }
 0x24b   : > { %v1643_v9 = vadd.f32 %v1557_v47, %v5127_v25  ;;  %v5497_v51 = vpop.permute.xlu0 %2343 }
 0x24c   : > { %2381 = vrot.lane.b32.xlu1 %v5113_v18, %s3609_s16  ;;  %v1408_v44 = vsel %vm539_vm1, 0.0, %v6433_v30  ;;  %v6438_v30 = vld [vmem:[#allocation63_spill] sm:$0xff] }
 0x24d   : > { %v1787_v14 = vadd.f32 %v1701_v13, %v1643_v9  ;;  %2379 = vrot.lane.b32.xlu0 %v2196_v39, %s3609_s16 }
 0x24e   : > { %v5505_v24 = vpop.permute.xlu1 %2345 }
 0x24f   : > { %v5511_v25 = vadd.f32 %v6330_v6, %v1787_v14  ;;  %v5513_v47 = vpop.permute.xlu0 %2487  ;;  %v6436_v6 = vld [vmem:[#allocation20_spill] sm:$0xff] }
 0x250   : > { %1740 = vrot.lane.b32.xlu1 %v1488_v4, %s3608_s18  ;;  %v6437_v9 = vrot.slane %v6436_v6, 7 }
 0x251   : > { %1594 = vrot.lane.b32.xlu0 %v1408_v44, %s3609_s16  ;;  %v6439_v44 = vrot.slane %v4724_v26, 1 }
 0x252   : > { %v1705_v18 = vpop.permute.xlu1 %1704  ;;  %v2197_v14 = vsel %vm539_vm1, 0.0, %v6437_v9 }
 0x253   : > { %v1559_v13 = vpop.permute.xlu0 %1558 }
 0x254   : > { %1596 = vrot.lane.b32.xlu1 %v6434_v60, %s3609_s16  ;;  %v1644_v3 = vadd.f32 %v1559_v13, %v5200_v12  ;;  %v1489_v60 = vsel %vm620_vm0, %v6439_v44, 0.0  ;;  %v6440_v13 = vrot.slane %v4735_v0, 7  ;;  %v6442_v44 = vld [vmem:[#allocation71_spill] sm:$0xff] }
 0x255   : > { %1738 = vrot.lane.b32.xlu0 %v6435_v29, %s3608_s18 }
 0x256   : > { %v5522_v39 = vpop.permute.xlu1 %2493  ;;  %v1409_v6 = vsel %vm539_vm1, 0.0, %v6440_v13 }
 0x257   : > { %v1703_v41 = vpop.permute.xlu0 %1702 }
 0x258   : > { %v1788_v4 = vadd.f32 %v1703_v41, %v1644_v3  ;;  %2385 = vrot.lane.b32.xlu1 %v6438_v30, %s3609_s16 }
 0x259   : > { %2383 = vrot.lane.b32.xlu0 %v2197_v14, %s3609_s16 }
 0x25a   : > { %v1561_v29 = vpop.permute.xlu1 %1560  ;;  %v5534_v12 = vadd.f32 %v4613_v54, %v1788_v4 }
 0x25b   : > { %v1645_v9 = vadd.f32 %v1561_v29, %v5209_v11  ;;  %v5540_v3 = vpop.permute.xlu0 %2347  ;;  %v6441_v11 = vrot.slane %v5218_v62, 7 }
 0x25c   : > { %1744 = vrot.lane.b32.xlu1 %v1489_v60, %s3608_s18  ;;  %v6443_v60 = vrot.slane %v6442_v44, 1 }
 0x25d   : > { %v1789_v41 = vadd.f32 %v1705_v18, %v1645_v9  ;;  %1598 = vrot.lane.b32.xlu0 %v1409_v6, %s3609_s16  ;;  %v2198_v18 = vsel %vm539_vm1, 0.0, %v6441_v11  ;;  %v6444_v9 = vld [vmem:[#allocation72_spill] sm:$0xff]  ;;  %v6449_v11 = vld [vmem:[#allocation75_spill] sm:$0xff] }
 0x25e   : > { %v5544_v26 = vpop.permute.xlu1 %2349 }
 0x25f   : > { %v5547_v14 = vadd.f32 %v4594_v7, %v1789_v41  ;;  %v5549_v54 = vpop.permute.xlu0 %2491 }
 0x260   : > { %1600 = vrot.lane.b32.xlu1 %v5193_v59, %s3609_s16 }
 0x261   : > { %1742 = vrot.lane.b32.xlu0 %v5205_v2, %s3608_s18  ;;  %v2269_v2 = vsel %vm620_vm0, %v6443_v60, 0.0 }
 0x262   : > { %v1709_v0 = vpop.permute.xlu1 %1708 }
 0x263   : > { %v1563_v4 = vpop.permute.xlu0 %1562 }
 0x264   : > { %2389 = vrot.lane.b32.xlu1 %v5236_v22, %s3609_s16  ;;  %v1646_v7 = vadd.f32 %v1563_v4, %v5263_v23 }
 0x265   : > { %2387 = vrot.lane.b32.xlu0 %v2198_v18, %s3609_s16  ;;  %v6450_v18 = vrot.slane %v6449_v11, 1 }
 0x266   : > { %v1565_v6 = vpop.permute.xlu1 %1564 }
 0x267   : > { %v1647_v30 = vadd.f32 %v1565_v6, %v5267_v48  ;;  %v1707_v59 = vpop.permute.xlu0 %1706  ;;  %v2270_v4 = vsel %vm620_vm0, %v6450_v18, 0.0 }
 0x268   : > { %v1790_v29 = vadd.f32 %v1707_v59, %v1646_v7  ;;  %2497 = vrot.lane.b32.xlu1 %v2269_v2, %s3608_s18 }
 0x269   : > { %v1791_v13 = vadd.f32 %v1709_v0, %v1647_v30  ;;  %2495 = vrot.lane.b32.xlu0 %v6444_v9, %s3608_s18  ;;  %v6451_v0 = vld [vmem:[#allocation77_spill] sm:$0xff]  ;;  %v6452_v30 = vld [vmem:[#allocation31_spill] sm:$0xff]  ;;  %v6455_v9 = vld [vmem:[#allocation84_spill] sm:$0xff] }
 0x26a   : > { %v5569_v22 = vpop.permute.xlu1 %2353  ;;  %v5572_v41 = vadd.f32 %v4673_v28, %v1790_v29  ;;  %v6453_v59 = vrot.slane %v6452_v30, 1  ;;  %v6456_v18 = vrot.slane %v6455_v9, 1 }
 0x26b   : > { %6445 = vst [vmem:[#allocation24_spill] sm:$0xff] %v5569_v22  ;;  %v5575_v23 = vadd.f32 %v6442_v44, %v1791_v13  ;;  %v5577_v48 = vpop.permute.xlu0 %2351  ;;  %v6454_v44 = vld [vmem:[#allocation81_spill] sm:$0xff] }
 0x26c   : > { %6446 = vst [vmem:[#allocation69_spill] sm:$0xff] %v5572_v41  ;;  %6448 = vst [vmem:[#allocation26_spill] sm:$0xff] %v5577_v48  ;;  %2501 = vrot.lane.b32.xlu1 %v2270_v4, %s3608_s18  ;;  %v2271_v28 = vsel %vm620_vm0, %v6453_v59, 0.0  ;;  %v2272_v4 = vsel %vm620_vm0, %v6456_v18, 0.0  ;;  %v6457_v59 = vld [vmem:[#allocation10_spill] sm:$0xff]  ;;  %v6473_v22 = vld [vmem:[#allocation89_spill] sm:$0xff] }
 0x26d   : > { %6447 = vst [vmem:[#allocation56_spill] sm:$0xff] %v5575_v23  ;;  %2499 = vrot.lane.b32.xlu0 %v6451_v0, %s3608_s18  ;;  %v6465_v18 = vld [vmem:[#allocation14_spill] sm:$0xff] }
 0x26e   : > { %v1713_v7 = vpop.permute.xlu1 %1712 }
 0x26f   : > { %v1567_v6 = vpop.permute.xlu0 %1566 }
 0x270   : > { %2505 = vrot.lane.b32.xlu1 %v2271_v28, %s3608_s18  ;;  %v1648_v60 = vadd.f32 %v1567_v6, %v5299_v52  ;;  %v6462_v6 = vld [vmem:[#allocation36_spill] sm:$0xff] }
 0x271   : > { %2503 = vrot.lane.b32.xlu0 %v6454_v44, %s3608_s18 }
 0x272   : > { %v1569_v2 = vpop.permute.xlu1 %1568 }
 0x273   : > { %v1649_v29 = vadd.f32 %v1569_v2, %v5303_v50  ;;  %v1711_v13 = vpop.permute.xlu0 %1710  ;;  %v6463_v2 = vrot.slane %v6462_v6, 1 }
 0x274   : > { %v1792_v0 = vadd.f32 %v1711_v13, %v1648_v60  ;;  %2509 = vrot.lane.b32.xlu1 %v2272_v4, %s3608_s18  ;;  %v6466_v4 = vrot.slane %v6465_v18, 1 }
 0x275   : > { %v1793_v48 = vadd.f32 %v1713_v7, %v1649_v29  ;;  %2507 = vrot.lane.b32.xlu0 %v6457_v59, %s3608_s18  ;;  %v2273_v60 = vsel %vm620_vm0, %v6463_v2, 0.0  ;;  %v6464_v7 = vld [vmem:[#allocation42_spill] sm:$0xff] }
 0x276   : > { %v5599_v28 = vpop.permute.xlu1 %2357  ;;  %v5602_v44 = vadd.f32 %v4731_v57, %v1792_v0  ;;  %v2274_v57 = vsel %vm620_vm0, %v6466_v4, 0.0  ;;  %v6469_v2 = vld [vmem:[#allocation6_spill] sm:$0xff]  ;;  %v6472_v4 = vld [vmem:[#allocation17_spill] sm:$0xff] }
 0x277   : > { %6458 = vst [vmem:[#allocation70_spill] sm:$0xff] %v5599_v28  ;;  %v5605_v52 = vadd.f32 %v6449_v11, %v1793_v48  ;;  %v5607_v50 = vpop.permute.xlu0 %2355  ;;  %v6467_v48 = vld [vmem:[#allocation13_spill] sm:$0xff]  ;;  %v6468_v11 = vld [vmem:[#allocation83_spill] sm:$0xff] }
 0x278   : > { %6459 = vst [vmem:[#allocation59_spill] sm:$0xff] %v5602_v44  ;;  %6461 = vst [vmem:[#allocation60_spill] sm:$0xff] %v5607_v50  ;;  %2513 = vrot.lane.b32.xlu1 %v2273_v60, %s3608_s18  ;;  %v6470_v44 = vld [vmem:[#allocation18_spill] sm:$0xff] }
 0x279   : > { %6460 = vst [vmem:[#allocation29_spill] sm:$0xff] %v5605_v52  ;;  %2511 = vrot.lane.b32.xlu0 %v6464_v7, %s3608_s18  ;;  %v6471_v28 = vrot.slane %v6470_v44, 1 }
 0x27a   : > { %v1717_v29 = vpop.permute.xlu1 %1716 }
 0x27b   : > { %v1571_v13 = vpop.permute.xlu0 %1570  ;;  %v2275_v7 = vsel %vm620_vm0, %v6471_v28, 0.0 }
 0x27c   : > { %2517 = vrot.lane.b32.xlu1 %v2274_v57, %s3608_s18  ;;  %v1650_v0 = vadd.f32 %v1571_v13, %v6468_v11 }
 0x27d   : > { %2515 = vrot.lane.b32.xlu0 %v6467_v48, %s3608_s18 }
 0x27e   : > { %v1573_v59 = vpop.permute.xlu1 %1572 }
 0x27f   : > { %v1651_v50 = vadd.f32 %v1573_v59, %v6469_v2  ;;  %v1715_v60 = vpop.permute.xlu0 %1714  ;;  %v6474_v59 = vrot.slane %v6473_v22, 1 }
 0x280   : > { %v1794_v52 = vadd.f32 %v1715_v60, %v1650_v0  ;;  %2521 = vrot.lane.b32.xlu1 %v2275_v7, %s3608_s18  ;;  %v6476_v60 = vld [vmem:[#allocation58_spill] sm:$0xff]  ;;  %v2424_v7 = vadd.f32 %v5342_v56, %v5348_v31  ;;  %v2426_v31 = vadd.f32 %v5385_v19, %v5391_v40 }
 0x281   : > { %v1795_v41 = vadd.f32 %v1717_v29, %v1651_v50  ;;  %2519 = vrot.lane.b32.xlu0 %v6472_v4, %s3608_s18  ;;  %v2276_v2 = vsel %vm620_vm0, %v6474_v59, 0.0  ;;  %v6475_v50 = vld [vmem:[#allocation21_spill] sm:$0xff] }
 0x282   : > { %v2362_v57 = vpop.permute.xlu1 %2361  ;;  %v2295_v48 = vadd.f32 %v6391_v27, %v1794_v52  ;;  %v6477_v27 = vrot.slane %v6476_v60, 1  ;;  %v2568_v56 = vadd.f32 %v5325_v61, %v2424_v7  ;;  %v2570_v61 = vadd.f32 %v5364_v58, %v2426_v31 }
 0x283   : > { %v2296_v13 = vadd.f32 %v6452_v30, %v1795_v41  ;;  %v2360_v11 = vpop.permute.xlu0 %2359  ;;  %v6478_v30 = vld [vmem:[#allocation39_spill] sm:$0xff]  ;;  %v2430_v58 = vadd.f32 %v5462_v15, %v5468_v10 }
 0x284   : > { %v5634_v23 = vadd.f32 %v2360_v11, %v2295_v48  ;;  %2525 = vrot.lane.b32.xlu1 %v2276_v2, %s3608_s18  ;;  %v2277_v41 = vsel %vm620_vm0, %v6477_v27, 0.0  ;;  %v6480_v11 = vrot.slane %v5216_v20, 1  ;;  %v6484_v10 = vld [vmem:[#allocation11_spill] sm:$0xff] }
 0x285   : > { %v5637_v28 = vadd.f32 %v2362_v57, %v2296_v13  ;;  %2523 = vrot.lane.b32.xlu0 %v6475_v50, %s3608_s18  ;;  %v6479_v57 = vld [vmem:[#allocation40_spill] sm:$0xff]  ;;  %v2423_v50 = vadd.f32 %v5336_v32, %v5333_v1  ;;  %v2425_v1 = vadd.f32 %v5377_v17, %v5371_v37  ;;  %v2427_v37 = vadd.f32 %v5420_v49, %v5414_v35 }
 0x286   : > { %v1721_v29 = vpop.permute.xlu1 %1720  ;;  %v2278_v59 = vsel %vm620_vm0, %v6480_v11, 0.0  ;;  %v2429_v11 = vadd.f32 %v5456_v33, %v5453_v43  ;;  %v2432_v49 = vadd.f32 %v5505_v24, %v5511_v25  ;;  %v2431_v33 = vadd.f32 %v5497_v51, %v5491_v53 }
 0x287   : > { %v1575_v0 = vpop.permute.xlu0 %1574  ;;  %v2569_v19 = vadd.f32 %v5393_v5, %v2425_v1  ;;  %v2434_v24 = vadd.f32 %v5544_v26, %v5547_v14  ;;  %v2433_v53 = vadd.f32 %v5540_v3, %v5534_v12 }
 0x288   : > { %v1652_v52 = vadd.f32 %v1575_v0, %v6478_v30  ;;  %2529 = vrot.lane.b32.xlu1 %v2277_v41, %s3608_s18  ;;  %v2567_v30 = vadd.f32 %v5350_v21, %v2423_v50  ;;  %v2575_v25 = vadd.f32 %v5513_v47, %v2431_v33 }
 0x289   : > { %2527 = vrot.lane.b32.xlu0 %v5177_v38, %s3608_s18  ;;  %v6481_v38 = vld [vmem:[#allocation66_spill] sm:$0xff]  ;;  %v2578_v51 = vadd.f32 %v5522_v39, %v2434_v24  ;;  %v6493_v24 = vld [vmem:[#allocation25_spill] sm:$0xff] }
 0x28a   : > { %v1577_v4 = vpop.permute.xlu1 %1576 }
 0x28b   : > { %v1653_v48 = vadd.f32 %v1577_v4, %v6479_v57  ;;  %v1719_v13 = vpop.permute.xlu0 %1718 }
 0x28c   : > { %v1796_v2 = vadd.f32 %v1719_v13, %v1652_v52  ;;  %2533 = vrot.lane.b32.xlu1 %v2278_v59, %s3608_s18  ;;  %v2573_v59 = vadd.f32 %v5470_v45, %v2429_v11 }
 0x28d   : > { %v1797_v0 = vadd.f32 %v1721_v29, %v1653_v48  ;;  %2531 = vrot.lane.b32.xlu0 %v6481_v38, %s3608_s18  ;;  %v6485_v38 = vld [vmem:[#allocation86_spill] sm:$0xff] }
 0x28e   : > { %v2366_v27 = vpop.permute.xlu1 %2365  ;;  %v2297_v41 = vadd.f32 %v6399_v34, %v1796_v2  ;;  %v2428_v34 = vadd.f32 %v5424_v42, %v5427_v46  ;;  %v2571_v42 = vadd.f32 %v5429_v16, %v2427_v37  ;;  %v6483_v46 = vld [vmem:[#allocation47_spill] sm:$0xff] }
 0x28f   : > { %v2298_v52 = vadd.f32 %v6455_v9, %v1797_v0  ;;  %v2364_v4 = vpop.permute.xlu0 %2363  ;;  %v6482_v9 = vld [vmem:[#allocation45_spill] sm:$0xff] }
 0x290   : > { %v5665_v57 = vadd.f32 %v2364_v4, %v2297_v41  ;;  %2633 = vrot.lane.b32.xlu1 %v2568_v56, %s3608_s18  ;;  %v2572_v17 = vadd.f32 %v5402_v36, %v2428_v34  ;;  %v2574_v36 = vadd.f32 %v5445_v55, %v2430_v58  ;;  %v2576_v55 = vadd.f32 %v5484_v63, %v2432_v49  ;;  %v6488_v34 = vld [vmem:[#allocation51_spill] sm:$0xff] }
 0x291   : > { %v5670_v32 = vadd.f32 %v2366_v27, %v2298_v52  ;;  %2631 = vrot.lane.b32.xlu0 %v2567_v30, %s3608_s18  ;;  %v2577_v63 = vadd.f32 %v5549_v54, %v2433_v53  ;;  %v6486_v27 = vld [vmem:[#allocation87_spill] sm:$0xff]  ;;  %v6487_v52 = vld [vmem:[#allocation12_spill] sm:$0xff] }
 0x292   : > { %v1725_v21 = vpop.permute.xlu1 %1724 }
 0x293   : > { %v1579_v40 = vpop.permute.xlu0 %1578 }
 0x294   : > { %v1654_v29 = vadd.f32 %v1579_v40, %v6482_v9  ;;  %2637 = vrot.lane.b32.xlu1 %v2570_v61, %s3608_s18  ;;  %v6489_v40 = vld [vmem:[#allocation22_spill] sm:$0xff] }
 0x295   : > { %2635 = vrot.lane.b32.xlu0 %v2569_v19, %s3608_s18 }
 0x296   : > { %v1581_v7 = vpop.permute.xlu1 %1580 }
 0x297   : > { %v1655_v5 = vadd.f32 %v1581_v7, %v6483_v46  ;;  %v1723_v48 = vpop.permute.xlu0 %1722  ;;  %v6490_v7 = vld [vmem:[#allocation49_spill] sm:$0xff] }
 0x298   : > { %v1798_v13 = vadd.f32 %v1723_v48, %v1654_v29  ;;  %2641 = vrot.lane.b32.xlu1 %v2572_v17, %s3608_s18 }
 0x299   : > { %v1799_v35 = vadd.f32 %v1725_v21, %v1655_v5  ;;  %2639 = vrot.lane.b32.xlu0 %v2571_v42, %s3608_s18 }
 0x29a   : > { %v2370_v15 = vpop.permute.xlu1 %2369  ;;  %v2299_v16 = vadd.f32 %v6484_v10, %v1798_v13  ;;  %v6491_v13 = vld [vmem:[#allocation64_spill] sm:$0xff] }
 0x29b   : > { %v2300_v2 = vadd.f32 %v6462_v6, %v1799_v35  ;;  %v2368_v50 = vpop.permute.xlu0 %2367 }
 0x29c   : > { %v5697_v0 = vadd.f32 %v2368_v50, %v2299_v16  ;;  %2645 = vrot.lane.b32.xlu1 %v2574_v36, %s3608_s18  ;;  %v6492_v36 = vld [vmem:[#allocation65_spill] sm:$0xff] }
 0x29d   : > { %v5702_v43 = vadd.f32 %v2370_v15, %v2300_v2  ;;  %2643 = vrot.lane.b32.xlu0 %v2573_v59, %s3608_s18 }
 0x29e   : > { %v1729_v45 = vpop.permute.xlu1 %1728 }
 0x29f   : > { %v1583_v6 = vpop.permute.xlu0 %1582 }
 0x2a0   : > { %v1656_v56 = vadd.f32 %v1583_v6, %v6485_v38  ;;  %2649 = vrot.lane.b32.xlu1 %v2576_v55, %s3608_s18  ;;  %v6494_v6 = vld [vmem:[#allocation23_spill] sm:$0xff] }
 0x2a1   : > { %2647 = vrot.lane.b32.xlu0 %v2575_v25, %s3608_s18 }
 0x2a2   : > { %v1585_v31 = vpop.permute.xlu1 %1584 }
 0x2a3   : > { %v1657_v26 = vadd.f32 %v1585_v31, %v6486_v27  ;;  %v1727_v14 = vpop.permute.xlu0 %1726 }
 0x2a4   : > { %v1800_v41 = vadd.f32 %v1727_v14, %v1656_v56  ;;  %2653 = vrot.lane.b32.xlu1 %v2578_v51, %s3608_s18 }
 0x2a5   : > { %v1801_v47 = vadd.f32 %v1729_v45, %v1657_v26  ;;  %2651 = vrot.lane.b32.xlu0 %v2577_v63, %s3608_s18  ;;  %v6495_v63 = vld [vmem:[#allocation20_spill] sm:$0xff] }
 0x2a6   : > { %v2374_v30 = vpop.permute.xlu1 %2373  ;;  %v2301_v4 = vadd.f32 %v6487_v52, %v1800_v41  ;;  %v6496_v41 = vld [vmem:[#allocation67_spill] sm:$0xff]  ;;  %v6497_v52 = vld [vmem:[#allocation68_spill] sm:$0xff] }
 0x2a7   : > { %v2302_v12 = vadd.f32 %v6465_v18, %v1801_v47  ;;  %v2372_v3 = vpop.permute.xlu0 %2371 }
 0x2a8   : > { %v5721_v1 = vadd.f32 %v2372_v3, %v2301_v4 }
 0x2a9   : > { %v5723_v39 = vadd.f32 %v2374_v30, %v2302_v12 }
 0x2aa   : > { %v1733_v54 = vpop.permute.xlu1 %1732 }
 0x2ab   : > { %v1587_v61 = vpop.permute.xlu0 %1586 }
 0x2ac   : > { %v1658_v21 = vadd.f32 %v1587_v61, %v6488_v34 }
 0x2ae   : > { %v1589_v19 = vpop.permute.xlu1 %1588 }
 0x2af   : > { %v1659_v9 = vadd.f32 %v1589_v19, %v6489_v40  ;;  %v1731_v29 = vpop.permute.xlu0 %1730  ;;  %v6498_v19 = vld [vmem:[#allocation56_spill] sm:$0xff] }
 0x2b0   : > { %v1802_v37 = vadd.f32 %v1731_v29, %v1658_v21  ;;  %v6499_v40 = vld [vmem:[#allocation24_spill] sm:$0xff]  ;;  %v6500_v29 = vld [vmem:[#allocation69_spill] sm:$0xff] }
 0x2b1   : > { %v1803_v17 = vadd.f32 %v1733_v54, %v1659_v9  ;;  %v2436_v9 = vadd.f32 %v6499_v40, %v6498_v19 }
 0x2b2   : > { %v5727_v58 = vpop.permute.xlu1 %2377  ;;  %v5730_v42 = vadd.f32 %v6490_v7, %v1802_v37  ;;  %v6501_v37 = vld [vmem:[#allocation26_spill] sm:$0xff] }
 0x2b3   : > { %v5733_v18 = vadd.f32 %v6470_v44, %v1803_v17  ;;  %v5735_v46 = vpop.permute.xlu0 %2375  ;;  %v2435_v17 = vadd.f32 %v6501_v37, %v6500_v29 }
 0x2b6   : > { %v1737_v5 = vpop.permute.xlu1 %1736 }
 0x2b7   : > { %v1591_v48 = vpop.permute.xlu0 %1590 }
 0x2b8   : > { %v1660_v11 = vadd.f32 %v1591_v48, %v6491_v13 }
 0x2ba   : > { %v1593_v35 = vpop.permute.xlu1 %1592 }
 0x2bb   : > { %v1661_v49 = vadd.f32 %v1593_v35, %v6492_v36  ;;  %v1735_v15 = vpop.permute.xlu0 %1734  ;;  %v6503_v35 = vld [vmem:[#allocation70_spill] sm:$0xff] }
 0x2bc   : > { %v1804_v10 = vadd.f32 %v1735_v15, %v1660_v11  ;;  %v6502_v11 = vld [vmem:[#allocation29_spill] sm:$0xff] }
 0x2bd   : > { %v1805_v16 = vadd.f32 %v1737_v5, %v1661_v49  ;;  %v2438_v36 = vadd.f32 %v6503_v35, %v6502_v11 }
 0x2be   : > { %v5739_v59 = vpop.permute.xlu1 %2381  ;;  %v5742_v2 = vadd.f32 %v6430_v8, %v1804_v10 }
 0x2bf   : > { %v5745_v44 = vadd.f32 %v6473_v22, %v1805_v16  ;;  %v5747_v50 = vpop.permute.xlu0 %2379 }
 0x2c2   : > { %v1741_v33 = vpop.permute.xlu1 %1740 }
 0x2c3   : > { %v1595_v55 = vpop.permute.xlu0 %1594 }
 0x2c4   : > { %v1662_v45 = vadd.f32 %v1595_v55, %v6493_v24 }
 0x2c6   : > { %v1597_v25 = vpop.permute.xlu1 %1596 }
 0x2c7   : > { %v1663_v38 = vadd.f32 %v1597_v25, %v6494_v6  ;;  %v1739_v56 = vpop.permute.xlu0 %1738 }
 0x2c8   : > { %v1806_v53 = vadd.f32 %v1739_v56, %v1662_v45 }
 0x2c9   : > { %v1807_v51 = vadd.f32 %v1741_v33, %v1663_v38 }
 0x2ca   : > { %v5751_v31 = vpop.permute.xlu1 %2385  ;;  %v5754_v8 = vadd.f32 %v6495_v63, %v1806_v53 }
 0x2cb   : > { %v5757_v22 = vadd.f32 %v6476_v60, %v1807_v51  ;;  %v5759_v27 = vpop.permute.xlu0 %2383 }
 0x2ce   : > { %v1745_v26 = vpop.permute.xlu1 %1744 }
 0x2cf   : > { %v1599_v14 = vpop.permute.xlu0 %1598 }
 0x2d0   : > { %v1664_v47 = vadd.f32 %v1599_v14, %v6496_v41  ;;  %v2448_v41 = vadd.f32 %v5727_v58, %v5733_v18 }
 0x2d2   : > { %v1601_v30 = vpop.permute.xlu1 %1600 }
 0x2d3   : > { %v1665_v4 = vadd.f32 %v1601_v30, %v6497_v52  ;;  %v1743_v12 = vpop.permute.xlu0 %1742 }
 0x2d4   : > { %v1808_v3 = vadd.f32 %v1743_v12, %v1664_v47 }
 0x2d5   : > { %v1809_v54 = vadd.f32 %v1745_v26, %v1665_v4  ;;  %v2452_v4 = vadd.f32 %v5751_v31, %v5757_v22 }
 0x2d6   : > { %v5763_v61 = vpop.permute.xlu1 %2389  ;;  %v5766_v34 = vadd.f32 %v5218_v62, %v1808_v3  ;;  %v6504_v62 = vld [vmem:[#allocation59_spill] sm:$0xff] }
 0x2d7   : > { %v5769_v60 = vadd.f32 %v5216_v20, %v1809_v54  ;;  %v5771_v21 = vpop.permute.xlu0 %2387  ;;  %v6505_v20 = vld [vmem:[#allocation60_spill] sm:$0xff] }
 0x2d8   : > { %v2437_v49 = vadd.f32 %v6505_v20, %v6504_v62  ;;  %v2453_v31 = vadd.f32 %v5771_v21, %v5766_v34 }
 0x2d9   : > { %v2454_v3 = vadd.f32 %v5763_v61, %v5769_v60 }
 0x2da   : > { %v2498_v7 = vpop.permute.xlu1 %2497 }
 0x2db   : > { %v2580_v5 = vadd.f32 %v2498_v7, %v2436_v9  ;;  %v2496_v48 = vpop.permute.xlu0 %2495 }
 0x2dc   : > { %v2579_v13 = vadd.f32 %v2496_v48, %v2435_v17 }
 0x2dd   : > { %2657 = vrot.lane.b32.xlu1 %v2580_v5, %s3608_s18 }
 0x2de   : > { %2655 = vrot.lane.b32.xlu0 %v2579_v13, %s3608_s18  ;;  %v2502_v15 = vpop.permute.xlu1 %2501 }
 0x2df   : > { %v2582_v10 = vadd.f32 %v2502_v15, %v2438_v36  ;;  %v2500_v16 = vpop.permute.xlu0 %2499 }
 0x2e0   : > { %v2581_v33 = vadd.f32 %v2500_v16, %v2437_v49 }
 0x2e1   : > { %2661 = vrot.lane.b32.xlu1 %v2582_v10, %s3608_s18 }
 0x2e2   : > { %2659 = vrot.lane.b32.xlu0 %v2581_v33, %s3608_s18  ;;  %v2506_v55 = vpop.permute.xlu1 %2505 }
 0x2e3   : > { %v2584_v24 = vadd.f32 %v2506_v55, %v5637_v28  ;;  %v2504_v45 = vpop.permute.xlu0 %2503 }
 0x2e4   : > { %v2583_v25 = vadd.f32 %v2504_v45, %v5634_v23 }
 0x2e5   : > { %2665 = vrot.lane.b32.xlu1 %v2584_v24, %s3608_s18 }
 0x2e6   : > { %2663 = vrot.lane.b32.xlu0 %v2583_v25, %s3608_s18  ;;  %v2510_v6 = vpop.permute.xlu1 %2509 }
 0x2e7   : > { %v2586_v38 = vadd.f32 %v2510_v6, %v5670_v32  ;;  %v2508_v56 = vpop.permute.xlu0 %2507 }
 0x2e8   : > { %v2585_v53 = vadd.f32 %v2508_v56, %v5665_v57 }
 0x2e9   : > { %2669 = vrot.lane.b32.xlu1 %v2586_v38, %s3608_s18 }
 0x2ea   : > { %2667 = vrot.lane.b32.xlu0 %v2585_v53, %s3608_s18  ;;  %v2514_v51 = vpop.permute.xlu1 %2513 }
 0x2eb   : > { %v2588_v28 = vadd.f32 %v2514_v51, %v5702_v43  ;;  %v2512_v63 = vpop.permute.xlu0 %2511  ;;  %v2447_v43 = vadd.f32 %v5735_v46, %v5730_v42 }
 0x2ec   : > { %v2587_v23 = vadd.f32 %v2512_v63, %v5697_v0 }
 0x2ed   : > { %2673 = vrot.lane.b32.xlu1 %v2588_v28, %s3608_s18 }
 0x2ee   : > { %2671 = vrot.lane.b32.xlu0 %v2587_v23, %s3608_s18  ;;  %v2518_v26 = vpop.permute.xlu1 %2517 }
 0x2ef   : > { %v2590_v32 = vadd.f32 %v2518_v26, %v5723_v39  ;;  %v2516_v14 = vpop.permute.xlu0 %2515  ;;  %v2450_v39 = vadd.f32 %v5739_v59, %v5745_v44  ;;  %v2451_v59 = vadd.f32 %v5759_v27, %v5754_v8 }
 0x2f0   : > { %v2589_v57 = vadd.f32 %v2516_v14, %v5721_v1  ;;  %v2449_v1 = vadd.f32 %v5747_v50, %v5742_v2 }
 0x2f1   : > { %2677 = vrot.lane.b32.xlu1 %v2590_v32, %s3608_s18 }
 0x2f2   : > { %2675 = vrot.lane.b32.xlu0 %v2589_v57, %s3608_s18  ;;  %v2522_v0 = vpop.permute.xlu1 %2521 }
 0x2f3   : > { %v2592_v47 = vadd.f32 %v2522_v0, %v2448_v41  ;;  %v2520_v30 = vpop.permute.xlu0 %2519 }
 0x2f4   : > { %v2591_v52 = vadd.f32 %v2520_v30, %v2447_v43 }
 0x2f5   : > { %2681 = vrot.lane.b32.xlu1 %v2592_v47, %s3608_s18 }
 0x2f6   : > { %2679 = vrot.lane.b32.xlu0 %v2591_v52, %s3608_s18  ;;  %v2526_v58 = vpop.permute.xlu1 %2525 }
 0x2f7   : > { %v2594_v42 = vadd.f32 %v2526_v58, %v2450_v39  ;;  %v2524_v18 = vpop.permute.xlu0 %2523 }
 0x2f8   : > { %v2593_v46 = vadd.f32 %v2524_v18, %v2449_v1 }
 0x2f9   : > { %2685 = vrot.lane.b32.xlu1 %v2594_v42, %s3608_s18 }
 0x2fa   : > { %2683 = vrot.lane.b32.xlu0 %v2593_v46, %s3608_s18  ;;  %v2530_v44 = vpop.permute.xlu1 %2529 }
 0x2fb   : > { %v2596_v2 = vadd.f32 %v2530_v44, %v2452_v4  ;;  %v2528_v50 = vpop.permute.xlu0 %2527 }
 0x2fc   : > { %v2595_v12 = vadd.f32 %v2528_v50, %v2451_v59 }
 0x2fd   : > { %2689 = vrot.lane.b32.xlu1 %v2596_v2, %s3608_s18 }
 0x2fe   : > { %2687 = vrot.lane.b32.xlu0 %v2595_v12, %s3608_s18  ;;  %v2534_v8 = vpop.permute.xlu1 %2533 }
 0x2ff   : > { %v2598_v22 = vadd.f32 %v2534_v8, %v2454_v3  ;;  %v2532_v27 = vpop.permute.xlu0 %2531 }
 0x300   : > { %v2597_v54 = vadd.f32 %v2532_v27, %v2453_v31 }
 0x301   : > { %2693 = vrot.lane.b32.xlu1 %v2598_v22, %s3608_s18 }
 0x302   : > { %2691 = vrot.lane.b32.xlu0 %v2597_v54, %s3608_s18  ;;  %v2634_v19 = vpop.permute.xlu1 %2633 }
 0x303   : > { %2729 = vst.msk [vmem:[%s5828_s24 + $0x8] sm:$0xff] %vm2727_vm2, %v2634_v19  ;;  %v2632_v61 = vpop.permute.xlu0 %2631 }
 0x304   : > { %2728 = vst.msk [vmem:[%s5828_s24] sm:$0xff] %vm2727_vm2, %v2632_v61 }
 0x306   : > { %v2638_v34 = vpop.permute.xlu1 %2637 }
 0x307   : > { %2731 = vst.msk [vmem:[%s5828_s24 + $0x18] sm:$0xff] %vm2727_vm2, %v2638_v34  ;;  %v2636_v60 = vpop.permute.xlu0 %2635 }
 0x308   : > { %2730 = vst.msk [vmem:[%s5828_s24 + $0x10] sm:$0xff] %vm2727_vm2, %v2636_v60 }
 0x30a   : > { %v2642_v21 = vpop.permute.xlu1 %2641 }
 0x30b   : > { %2733 = vst.msk [vmem:[%s5828_s24 + $0x28] sm:$0xff] %vm2727_vm2, %v2642_v21  ;;  %v2640_v40 = vpop.permute.xlu0 %2639 }
 0x30c   : > { %2732 = vst.msk [vmem:[%s5828_s24 + $0x20] sm:$0xff] %vm2727_vm2, %v2640_v40 }
 0x30e   : > { %v2646_v9 = vpop.permute.xlu1 %2645 }
 0x30f   : > { %2735 = vst.msk [vmem:[%s5828_s24 + $0x38] sm:$0xff] %vm2727_vm2, %v2646_v9  ;;  %v2644_v29 = vpop.permute.xlu0 %2643 }
 0x310   : > { %2734 = vst.msk [vmem:[%s5828_s24 + $0x30] sm:$0xff] %vm2727_vm2, %v2644_v29 }
 0x312   : > { %v2650_v37 = vpop.permute.xlu1 %2649 }
 0x313   : > { %2737 = vst.msk [vmem:[%s5828_s24 + $0x48] sm:$0xff] %vm2727_vm2, %v2650_v37  ;;  %v2648_v17 = vpop.permute.xlu0 %2647 }
 0x314   : > { %2736 = vst.msk [vmem:[%s5828_s24 + $0x40] sm:$0xff] %vm2727_vm2, %v2648_v17 }
 0x316   : > { %v2654_v7 = vpop.permute.xlu1 %2653 }
 0x317   : > { %2739 = vst.msk [vmem:[%s5828_s24 + $0x58] sm:$0xff] %vm2727_vm2, %v2654_v7  ;;  %v2652_v5 = vpop.permute.xlu0 %2651 }
 0x318   : > { %2738 = vst.msk [vmem:[%s5828_s24 + $0x50] sm:$0xff] %vm2727_vm2, %v2652_v5 }
 0x34f   : > { %v2658_v48 = vpop.permute.xlu1 %2657 }
 0x350   : > { %2741 = vst.msk [vmem:[%s5828_s24 + $0x68] sm:$0xff] %vm2727_vm2, %v2658_v48  ;;  %v2656_v13 = vpop.permute.xlu0 %2655 }
 0x351   : > { %2740 = vst.msk [vmem:[%s5828_s24 + $0x60] sm:$0xff] %vm2727_vm2, %v2656_v13 }
 0x353   : > { %v2662_v11 = vpop.permute.xlu1 %2661 }
 0x354   : > { %2743 = vst.msk [vmem:[%s5828_s24 + $0x78] sm:$0xff] %vm2727_vm2, %v2662_v11  ;;  %v2660_v35 = vpop.permute.xlu0 %2659 }
 0x355   : > { %2742 = vst.msk [vmem:[%s5828_s24 + $0x70] sm:$0xff] %vm2727_vm2, %v2660_v35 }
 0x357   : > { %v2666_v36 = vpop.permute.xlu1 %2665 }
 0x358   : > { %2745 = vst.msk [vmem:[%s5828_s24 + $0x88] sm:$0xff] %vm2727_vm2, %v2666_v36  ;;  %v2664_v62 = vpop.permute.xlu0 %2663 }
 0x359   : > { %2744 = vst.msk [vmem:[%s5828_s24 + $0x80] sm:$0xff] %vm2727_vm2, %v2664_v62 }
 0x35b   : > { %v2670_v20 = vpop.permute.xlu1 %2669 }
 0x35c   : > { %2747 = vst.msk [vmem:[%s5828_s24 + $0x98] sm:$0xff] %vm2727_vm2, %v2670_v20  ;;  %v2668_v49 = vpop.permute.xlu0 %2667 }
 0x35d   : > { %2746 = vst.msk [vmem:[%s5828_s24 + $0x90] sm:$0xff] %vm2727_vm2, %v2668_v49 }
 0x35f   : > { %v2674_v15 = vpop.permute.xlu1 %2673 }
 0x360   : > { %2749 = vst.msk [vmem:[%s5828_s24 + $0xa8] sm:$0xff] %vm2727_vm2, %v2674_v15  ;;  %v2672_v10 = vpop.permute.xlu0 %2671 }
 0x361   : > { %2748 = vst.msk [vmem:[%s5828_s24 + $0xa0] sm:$0xff] %vm2727_vm2, %v2672_v10 }
 0x363   : > { %v2678_v16 = vpop.permute.xlu1 %2677 }
 0x364   : > { %2751 = vst.msk [vmem:[%s5828_s24 + $0xb8] sm:$0xff] %vm2727_vm2, %v2678_v16  ;;  %v2676_v33 = vpop.permute.xlu0 %2675 }
 0x365   : > { %2750 = vst.msk [vmem:[%s5828_s24 + $0xb0] sm:$0xff] %vm2727_vm2, %v2676_v33 }
 0x367   : > { %v2682_v55 = vpop.permute.xlu1 %2681 }
 0x368   : > { %2753 = vst.msk [vmem:[%s5828_s24 + $0xc8] sm:$0xff] %vm2727_vm2, %v2682_v55  ;;  %v2680_v24 = vpop.permute.xlu0 %2679 }
 0x369   : > { %2752 = vst.msk [vmem:[%s5828_s24 + $0xc0] sm:$0xff] %vm2727_vm2, %v2680_v24 }
 0x36b   : > { %v2686_v45 = vpop.permute.xlu1 %2685 }
 0x36c   : > { %2755 = vst.msk [vmem:[%s5828_s24 + $0xd8] sm:$0xff] %vm2727_vm2, %v2686_v45  ;;  %v2684_v25 = vpop.permute.xlu0 %2683 }
 0x36d   : > { %2754 = vst.msk [vmem:[%s5828_s24 + $0xd0] sm:$0xff] %vm2727_vm2, %v2684_v25 }
 0x36f   : > { %v2690_v6 = vpop.permute.xlu1 %2689 }
 0x370   : > { %2757 = vst.msk [vmem:[%s5828_s24 + $0xe8] sm:$0xff] %vm2727_vm2, %v2690_v6  ;;  %v2688_v38 = vpop.permute.xlu0 %2687 }
 0x371   : > { %2756 = vst.msk [vmem:[%s5828_s24 + $0xe0] sm:$0xff] %vm2727_vm2, %v2688_v38 }
 0x373   : > { %v2694_v56 = vpop.permute.xlu1 %2693 }
 0x374   : > { %2759 = vst.msk [vmem:[%s5828_s24 + $0xf8] sm:$0xff] %vm2727_vm2, %v2694_v56  ;;  %v2692_v53 = vpop.permute.xlu0 %2691 }
 0x375   : > { %2758 = vst.msk [vmem:[%s5828_s24 + $0xf0] sm:$0xff] %vm2727_vm2, %v2692_v53 }
 0x376   : > { %3540 = shalt.err (!%p3537_p5)
}
 0x377   : > { %s3541_s6 = scalar_lea.hbm %s5895_s29, 4096  ;;  %s3545_s15 = scalar_lea.hbm %s5953_s2, 8192 }
 0x378   : > { %p3542_p6 = scmp.ne.s32.totalorder %s5895_s29, %s3541_s6  ;;  %p3546_p10 = scmp.lt.u32.totalorder %s5895_s29, %s5953_s2 }
 0x379   : > { %p3547_p11 = scmp.lt.u32.totalorder %s3545_s15, %s3541_s6  ;;  %p3549_p13 = scmp.lt.u32.totalorder %s3541_s6, %s5895_s29 }
 0x37a   : > { %p3543_p7 = pnand %p3542_p6, %p3668_p4 }
 0x37b   : > { %p3548_p12 = por %p3547_p11, %p3546_p10 }
 0x37c   : > { %p3544_p9 = pneg %p3543_p7 }
 0x37d   : > { %p3550_p0 = por %p3549_p13, %p3548_p12 }
 0x37f   : > { %p3551_p1 = pnand %p3550_p0, %p3544_p9 }
 0x381   : > { %3554 = shalt.err (!%p3551_p1)
}
 0x382   : > { %s3611_s20 = smov 128   ;;  %s3612_s23 = smov 8  }
 0x383   : > { %3467 = dma.vmem_to_hbm [thread:$0]  (%p3668_p4), %s5897_s26, 4096, %s5895_s29, %s5905_s12, %s3611_s20, %s3611_s20, %s3612_s23  }
 0x384 PF: > { %p3473_p2 = scmp.ge.s32.totalorder %s3605_s14, 2  ;;  %s2792_s24 = sand.u32 1, %s3585_s9  }
 0x385   : > { %s2793_s25 = scalar_lea.sflag [#allocation4], %s2792_s24 }
 0x386   : > { %p3470_p3 = pnand %p3473_p2, %p3675_p8 }
 0x388   : > { %3580 = dma.done.wait (!%p3470_p3), %s2793_s25, 4096  }
 0x389   : > { %3582 = vsyncadd (!%p3470_p3), %s2793_s25, 4294963200  ;;  %s15_s14 = sadd.s32 1, %s3605_s14   ;;  %s6506_s9 = smov %s3589_s10 }
 0x38a   : > { %p12_p5 = scmp.ge.s32.totalorder %s15_s14, 4   ;;  %s6507_s10 = smov %s3593_s11 }
 0x38b   : > { %s6508_s11 = smov %s3681_s22  ;;  %s6509_s12 = smov %s3601_s13 }
 0x38c   : > { %s6510_s13 = smov %s6512_s17  ;;  %14 = sbr.rel (!%p12_p5) target bundleno = 4 (0x4), region = 74 }
 0x393   :  { %2798 = vsyncpa [#allocation4], 1 }
 0x394   :  { %2800 = vsyncpa [#allocation4 + $0x1], 1 }

</bundles_post_ra>
